<compile_context>
chip_gen: v7x
topology: tpu7x:2x2x1
jax: 0.10.0
libtpu: 0.0.40
codegen_flags: <defaults>
</compile_context>

<pallas_src>
import functools

import jax
import jax.numpy as jnp
from jax.experimental import pallas as pl
from jax.experimental.pallas import tpu as pltpu

LN_EPS = 1e-5
LANE = 128


def _round_up(n, m):
    return ((n + m - 1) // m) * m


def _cdiv(a, b):
    return -(-a // b)


def _layernorm(x, gamma, beta):
    # PyTorch LayerNorm: biased variance, eps inside sqrt. f32 math.
    mean = jnp.mean(x, axis=-1, keepdims=True)
    xc = x - mean
    var = jnp.mean(xc * xc, axis=-1, keepdims=True)
    inv = jax.lax.rsqrt(var + LN_EPS)
    return xc * inv * gamma + beta


# ---------------------------------------------------------------------------
# Kernel
# ---------------------------------------------------------------------------
def forward_kernel(
    x_ref,                                   # [TM, IN]               bf16
    emb_w_ref, emb_b_ref,                    # [IN, H] bf16, [1,H] f32 (pe folded)
    wattn_ref, battn_ref,                    # [L,H,H] bf16, [L,1,H]  f32 (Wv@Wo fused)
    ln1_g_ref, ln1_b_ref,                    # [L,1,H], [L,1,H]       f32
    w1_ref, b1_ref, w2_ref, b2_ref,          # [L,H,4H] bf16, [L,1,4H], [L,4H,H] bf16, [L,1,H]
    ln2_g_ref, ln2_b_ref,                    # [L,1,H], [L,1,H]       f32
    h1w_ref, h1b_ref,                        # [H, 3*h2] bf16, [1, 3*h2] f32 (3 heads packed)
    h2w_ref, h2b_ref,                        # [3*h2, OUT_PAD] bf16 (block-diag), [1, OUT_PAD] f32
    out_ref,                                 # [TM, OUT_PAD]          f32
    *, num_periods,
):
    # feature embedding (+ positional encoding already folded into the bias)
    h = jnp.dot(x_ref[...], emb_w_ref[...],
                preferred_element_type=jnp.float32) + emb_b_ref[...]

    num_layers = wattn_ref.shape[0]
    # Static unroll is fine for small L (=2).  # TODO(synk): switch to
    # lax.fori_loop with dynamic wattn_ref[l] indexing if num_layers grows.
    for l in range(num_layers):
        # --- self-attention block (seq_len == 1: fused value/out projection) ---
        sa = jnp.dot(h.astype(jnp.bfloat16), wattn_ref[l],
                     preferred_element_type=jnp.float32) + battn_ref[l]
        h = _layernorm(h + sa, ln1_g_ref[l], ln1_b_ref[l])

        # --- feed-forward block (ReLU) ---
        ff1 = jnp.maximum(
            jnp.dot(h.astype(jnp.bfloat16), w1_ref[l],
                    preferred_element_type=jnp.float32) + b1_ref[l], 0.0)
        ff = jnp.dot(ff1.astype(jnp.bfloat16), w2_ref[l],
                     preferred_element_type=jnp.float32) + b2_ref[l]
        h = _layernorm(h + ff, ln2_g_ref[l], ln2_b_ref[l])

    # --- packed task heads: one wide matmul pair, one lane-dense store ---
    z = jnp.maximum(
        jnp.dot(h.astype(jnp.bfloat16), h1w_ref[...],
                preferred_element_type=jnp.float32) + h1b_ref[...], 0.0)
    logits = jnp.dot(z.astype(jnp.bfloat16), h2w_ref[...],
                     preferred_element_type=jnp.float32) + h2b_ref[...]

    # columns [0, P) = setup head (sigmoid), the rest (prod / inv / padding) = ReLU
    col = jax.lax.broadcasted_iota(jnp.int32, logits.shape, 1)
    out_ref[...] = jnp.where(col < num_periods,
                             jax.nn.sigmoid(logits),
                             jnp.maximum(logits, 0.0))


# ---------------------------------------------------------------------------
# Parameter construction / offline fusion
# ---------------------------------------------------------------------------
def make_positional_encoding_row0(d_model):
    # pe[0, :] of the PositionalEncoding buffer (position = 0).
    pe = jnp.zeros((d_model,), jnp.float32)
    pos = 0.0
    div_term = jnp.exp(
        jnp.arange(0, d_model, 2, dtype=jnp.float32) * (-jnp.log(10000.0) / d_model)
    )
    pe = pe.at[0::2].set(jnp.sin(pos * div_term))
    pe = pe.at[1::2].set(jnp.cos(pos * div_term))
    return pe.reshape(1, d_model)


def init_raw_params(key, input_dim, num_periods, hidden_dim, num_layers):
    """Deterministic synthetic parameters (weights stored as [in, out], f32)."""
    h, h2, ff = hidden_dim, hidden_dim // 2, hidden_dim * 4
    keys = iter(jax.random.split(key, 64))

    def w(shape, scale=0.1):
        return (scale * jax.random.normal(next(keys), shape)).astype(jnp.float32)

    p = {}
    p["emb_w"] = w((input_dim, h))
    p["emb_b"] = w((1, h))
    p["pe"] = make_positional_encoding_row0(h)

    p["wv"] = w((num_layers, h, h))
    p["bv"] = w((num_layers, 1, h))
    p["wo"] = w((num_layers, h, h))
    p["bo"] = w((num_layers, 1, h))
    p["ln1_g"] = jnp.ones((num_layers, 1, h), jnp.float32)
    p["ln1_b"] = jnp.zeros((num_layers, 1, h), jnp.float32)
    p["w1"] = w((num_layers, h, ff))
    p["b1"] = w((num_layers, 1, ff))
    p["w2"] = w((num_layers, ff, h))
    p["b2"] = w((num_layers, 1, h))
    p["ln2_g"] = jnp.ones((num_layers, 1, h), jnp.float32)
    p["ln2_b"] = jnp.zeros((num_layers, 1, h), jnp.float32)

    for name in ("s", "p", "i"):
        p[f"{name}h1w"] = w((h, h2))
        p[f"{name}h1b"] = w((1, h2))
        p[f"{name}h2w"] = w((h2, num_periods))
        p[f"{name}h2b"] = w((1, num_periods))
    return p


def pack_params(raw, input_dim, num_periods, hidden_dim):
    """Offline algebraic fusion + bf16 cast of matmul weights."""
    h2 = hidden_dim // 2
    P = num_periods
    out_pad = _round_up(max(3 * P, LANE), LANE)

    # embedding stays un-padded: [input_dim, H]; PE row 0 folded into the bias
    emb_w = raw["emb_w"]
    emb_b = raw["emb_b"] + raw["pe"]

    # fuse attention value/output projections (seq_len == 1 => softmax == 1)
    w_attn = jnp.einsum("lij,ljk->lik", raw["wv"], raw["wo"])
    b_attn = jnp.einsum("lij,ljk->lik", raw["bv"], raw["wo"]) + raw["bo"]

    # pack the three task heads into one wide first stage + block-diag second
    h1w = jnp.concatenate([raw["sh1w"], raw["ph1w"], raw["ih1w"]], axis=1)   # [H, 3*h2]
    h1b = jnp.concatenate([raw["sh1b"], raw["ph1b"], raw["ih1b"]], axis=1)   # [1, 3*h2]
    h2w = jnp.zeros((3 * h2, out_pad), jnp.float32)
    h2w = h2w.at[0 * h2:1 * h2, 0 * P:1 * P].set(raw["sh2w"])
    h2w = h2w.at[1 * h2:2 * h2, 1 * P:2 * P].set(raw["ph2w"])
    h2w = h2w.at[2 * h2:3 * h2, 2 * P:3 * P].set(raw["ih2w"])
    h2b = jnp.zeros((1, out_pad), jnp.float32)
    h2b = h2b.at[:, 0 * P:1 * P].set(raw["sh2b"])
    h2b = h2b.at[:, 1 * P:2 * P].set(raw["ph2b"])
    h2b = h2b.at[:, 2 * P:3 * P].set(raw["ih2b"])

    bf16 = jnp.bfloat16
    return {
        "emb_w": emb_w.astype(bf16), "emb_b": emb_b,
        "w_attn": w_attn.astype(bf16), "b_attn": b_attn,
        "ln1_g": raw["ln1_g"], "ln1_b": raw["ln1_b"],
        "w1": raw["w1"].astype(bf16), "b1": raw["b1"],
        "w2": raw["w2"].astype(bf16), "b2": raw["b2"],
        "ln2_g": raw["ln2_g"], "ln2_b": raw["ln2_b"],
        "h1w": h1w.astype(bf16), "h1b": h1b,
        "h2w": h2w.astype(bf16), "h2b": h2b,
    }


PARAM_ORDER = (
    "emb_w", "emb_b", "w_attn", "b_attn", "ln1_g", "ln1_b",
    "w1", "b1", "w2", "b2", "ln2_g", "ln2_b",
    "h1w", "h1b", "h2w", "h2b",
)


# ---------------------------------------------------------------------------
# Wrapper
# ---------------------------------------------------------------------------
@functools.partial(
    jax.jit, static_argnames=("num_periods", "block_b", "single_buffer_weights"))
def _forward_impl(x, packed, num_periods, block_b, single_buffer_weights):
    B, in_dim = x.shape
    hidden = packed["emb_w"].shape[1]
    h2x3 = packed["h1w"].shape[1]
    out_pad = packed["h2w"].shape[1]
    num_layers = packed["w_attn"].shape[0]

    # --- batch tiling: balance tiles; ensure >=2 grid steps when possible so
    #     v7x can shard the "parallel" axis over its two TensorCores.
    n_tiles = _cdiv(B, block_b)
    if n_tiles == 1 and B > 8:
        n_tiles = 2
    tm = _round_up(_cdiv(B, n_tiles), 8)
    b_pad = _round_up(B, tm)
    grid = b_pad // tm

    # --- x streamed as bf16, un-padded feature dim (last block dim == full dim)
    x_bf = x.astype(jnp.bfloat16)
    if b_pad == B:
        x_pad = x_bf
    else:
        x_pad = jnp.zeros((b_pad, in_dim), jnp.bfloat16).at[:B].set(x_bf)

    weights = tuple(packed[name] for name in PARAM_ORDER)

    def resident_spec(arr):
        nd = arr.ndim
        idx = lambda i, _nd=nd: (0,) * _nd    # constant => DMA'd once, VMEM-resident
        if single_buffer_weights:
            return pl.BlockSpec(arr.shape, idx, pipeline_mode=pl.Buffered(1))
        return pl.BlockSpec(arr.shape, idx)

    in_specs = [pl.BlockSpec((tm, in_dim), lambda i: (i, 0))]
    in_specs += [resident_spec(w) for w in weights]

    # --- explicit VMEM budget (default scoped limit is 16/32 MiB; cap at v7x's
    #     64 MiB physical per TensorCore).
    weight_bytes = sum(int(w.size) * w.dtype.itemsize for w in weights)
    wmult = 1 if single_buffer_weights else 2
    io_bytes = 2 * (tm * in_dim * 2 + tm * out_pad * 4)          # double-buffered tiles
    act_bytes = tm * (5 * hidden + h2x3 + out_pad) * 4           # live f32 activations
    need = wmult * weight_bytes + io_bytes + 2 * act_bytes
    vmem_limit = int(min(max(2 * need, 32 << 20), 64 << 20))

    flops = 2 * b_pad * (in_dim * hidden + num_layers * 9 * hidden * hidden
                         + hidden * h2x3 + h2x3 * out_pad)
    cost = pl.CostEstimate(
        flops=int(flops),
        transcendentals=int(b_pad * (num_periods + 2 * num_layers)),
        bytes_accessed=int(b_pad * in_dim * 2 + b_pad * out_pad * 4 + weight_bytes),
    )

    out = pl.pallas_call(
        functools.partial(forward_kernel, num_periods=num_periods),
        out_shape=jax.ShapeDtypeStruct((b_pad, out_pad), jnp.float32),
        grid=(grid,),
        in_specs=in_specs,
        out_specs=pl.BlockSpec((tm, out_pad), lambda i: (i, 0)),
        compiler_params=pltpu.CompilerParams(
            dimension_semantics=("parallel",),   # v7x: shard batch over both TCs
            vmem_limit_bytes=vmem_limit,
        ),
        cost_estimate=cost,
    )(x_pad, *weights)

    P = num_periods
    return out[:B, 0:P], out[:B, P:2 * P], out[:B, 2 * P:3 * P]


def transformer_planning_forward(x, packed, num_periods, block_b=512):
    try:
        return _forward_impl(x, packed, num_periods, block_b, True)
    except Exception:
        # Fallback if single-buffered (Buffered(1)) weight specs are not
        # supported by the installed JAX/Mosaic version.
        return _forward_impl(x, packed, num_periods, block_b, False)


# ---------------------------------------------------------------------------
# Pure-JAX reference (unfused, f32) for a tolerance check
# ---------------------------------------------------------------------------
def reference_forward(x, raw):
    h = x @ raw["emb_w"] + raw["emb_b"] + raw["pe"]
    for l in range(raw["wv"].shape[0]):
        v = h @ raw["wv"][l] + raw["bv"][l]
        sa = v @ raw["wo"][l] + raw["bo"][l]
        h = _layernorm(h + sa, raw["ln1_g"][l], raw["ln1_b"][l])
        ff1 = jnp.maximum(h @ raw["w1"][l] + raw["b1"][l], 0.0)
        ff = ff1 @ raw["w2"][l] + raw["b2"][l]
        h = _layernorm(h + ff, raw["ln2_g"][l], raw["ln2_b"][l])

    def head(w1, b1, w2, b2):
        z = jnp.maximum(h @ w1 + b1, 0.0)
        return z @ w2 + b2

    setup = jax.nn.sigmoid(head(raw["sh1w"], raw["sh1b"], raw["sh2w"], raw["sh2b"]))
    prod = jnp.maximum(head(raw["ph1w"], raw["ph1b"], raw["ph2w"], raw["ph2b"]), 0.0)
    inv = jnp.maximum(head(raw["ih1w"], raw["ih1b"], raw["ih2w"], raw["ih2b"]), 0.0)
    return setup, prod, inv


if __name__ == "__main__":
    # Small shapes consistent with the module's forward([batch, input_dim]).
    B, INPUT_DIM, NUM_PERIODS, HIDDEN, NUM_LAYERS = 2, 16, 8, 32, 2

    key = jax.random.PRNGKey(0)
    k_x, k_p = jax.random.split(key)
    x = jax.random.normal(k_x, (B, INPUT_DIM), dtype=jnp.float32)

    raw = init_raw_params(k_p, INPUT_DIM, NUM_PERIODS, HIDDEN, NUM_LAYERS)
    packed = pack_params(raw, INPUT_DIM, NUM_PERIODS, HIDDEN)

    setup_out, prod_out, inv_out = transformer_planning_forward(
        x, packed, num_periods=NUM_PERIODS
    )
    jax.block_until_ready((setup_out, prod_out, inv_out))

    assert setup_out.shape == (B, NUM_PERIODS)
    assert prod_out.shape == (B, NUM_PERIODS)
    assert inv_out.shape == (B, NUM_PERIODS)

    # tolerance check vs. unfused f32 reference (bf16 matmuls => loose tol)
    ref_setup, ref_prod, ref_inv = reference_forward(x, raw)
    max_diff = max(
        float(jnp.max(jnp.abs(setup_out - ref_setup))),
        float(jnp.max(jnp.abs(prod_out - ref_prod))),
        float(jnp.max(jnp.abs(inv_out - ref_inv))),
    )
    assert max_diff < 0.1, f"kernel vs reference max abs diff {max_diff}"

    print("KERNEL_OK")
</pallas_src>

<mosaic_0001>
module attributes {stable_mosaic.version = 11 : i64} {
  func.func @forward_kernel(%arg0: i32, %arg1: memref<8x16xbf16, #tpu.memory_space<vmem>>, %arg2: memref<16x32xbf16, #tpu.memory_space<vmem>>, %arg3: memref<1x32xf32, #tpu.memory_space<vmem>>, %arg4: memref<2x32x32xbf16, #tpu.memory_space<vmem>>, %arg5: memref<2x1x32xf32, #tpu.memory_space<vmem>>, %arg6: memref<2x1x32xf32, #tpu.memory_space<vmem>>, %arg7: memref<2x1x32xf32, #tpu.memory_space<vmem>>, %arg8: memref<2x32x128xbf16, #tpu.memory_space<vmem>>, %arg9: memref<2x1x128xf32, #tpu.memory_space<vmem>>, %arg10: memref<2x128x32xbf16, #tpu.memory_space<vmem>>, %arg11: memref<2x1x32xf32, #tpu.memory_space<vmem>>, %arg12: memref<2x1x32xf32, #tpu.memory_space<vmem>>, %arg13: memref<2x1x32xf32, #tpu.memory_space<vmem>>, %arg14: memref<32x48xbf16, #tpu.memory_space<vmem>>, %arg15: memref<1x48xf32, #tpu.memory_space<vmem>>, %arg16: memref<48x128xbf16, #tpu.memory_space<vmem>>, %arg17: memref<1x128xf32, #tpu.memory_space<vmem>>, %arg18: memref<8x128xf32, #tpu.memory_space<vmem>>) attributes {dimension_semantics = [#tpu.dimension_semantics<parallel>], iteration_bounds = array<i64: 1>, scalar_prefetch = 0 : i64, scratch_operands = 0 : i64, tpu.core_type = #tpu.core_type<tc>, window_params = [{transform_indices = @transform_0, window_bounds = array<i64: 8, 16>}, {pipeline_mode = #tpu.pipeline_mode<synchronous>, transform_indices = @transform_1, window_bounds = array<i64: 16, 32>}, {pipeline_mode = #tpu.pipeline_mode<synchronous>, transform_indices = @transform_2, window_bounds = array<i64: 1, 32>}, {pipeline_mode = #tpu.pipeline_mode<synchronous>, transform_indices = @transform_3, window_bounds = array<i64: 2, 32, 32>}, {pipeline_mode = #tpu.pipeline_mode<synchronous>, transform_indices = @transform_4, window_bounds = array<i64: 2, 1, 32>}, {pipeline_mode = #tpu.pipeline_mode<synchronous>, transform_indices = @transform_5, window_bounds = array<i64: 2, 1, 32>}, {pipeline_mode = #tpu.pipeline_mode<synchronous>, transform_indices = @transform_6, window_bounds = array<i64: 2, 1, 32>}, {pipeline_mode = #tpu.pipeline_mode<synchronous>, transform_indices = @transform_7, window_bounds = array<i64: 2, 32, 128>}, {pipeline_mode = #tpu.pipeline_mode<synchronous>, transform_indices = @transform_8, window_bounds = array<i64: 2, 1, 128>}, {pipeline_mode = #tpu.pipeline_mode<synchronous>, transform_indices = @transform_9, window_bounds = array<i64: 2, 128, 32>}, {pipeline_mode = #tpu.pipeline_mode<synchronous>, transform_indices = @transform_10, window_bounds = array<i64: 2, 1, 32>}, {pipeline_mode = #tpu.pipeline_mode<synchronous>, transform_indices = @transform_11, window_bounds = array<i64: 2, 1, 32>}, {pipeline_mode = #tpu.pipeline_mode<synchronous>, transform_indices = @transform_12, window_bounds = array<i64: 2, 1, 32>}, {pipeline_mode = #tpu.pipeline_mode<synchronous>, transform_indices = @transform_13, window_bounds = array<i64: 32, 48>}, {pipeline_mode = #tpu.pipeline_mode<synchronous>, transform_indices = @transform_14, window_bounds = array<i64: 1, 48>}, {pipeline_mode = #tpu.pipeline_mode<synchronous>, transform_indices = @transform_15, window_bounds = array<i64: 48, 128>}, {pipeline_mode = #tpu.pipeline_mode<synchronous>, transform_indices = @transform_16, window_bounds = array<i64: 1, 128>}, {transform_indices = @transform_17, window_bounds = array<i64: 8, 128>}]} {
    %c0 = arith.constant 0 : index
    %c0_0 = arith.constant 0 : index
    %0 = vector.load %arg1[%c0, %c0_0] : memref<8x16xbf16, #tpu.memory_space<vmem>>, vector<8x16xbf16>
    %c0_1 = arith.constant 0 : index
    %c0_2 = arith.constant 0 : index
    %1 = vector.load %arg2[%c0_1, %c0_2] : memref<16x32xbf16, #tpu.memory_space<vmem>>, vector<16x32xbf16>
    %cst = arith.constant dense<0.000000e+00> : vector<8x32xf32>
    %2 = tpu.matmul %0, %1, %cst {dimension_numbers = #tpu.dot_dimension_numbers<[1], [0], [0], [1], [0, 0, 1, 1], [], []>} : vector<8x16xbf16>, vector<16x32xbf16>, vector<8x32xf32> -> vector<8x32xf32>
    %c0_3 = arith.constant 0 : index
    %c0_4 = arith.constant 0 : index
    %3 = vector.load %arg3[%c0_3, %c0_4] : memref<1x32xf32, #tpu.memory_space<vmem>>, vector<1x32xf32>
    %4 = vector.broadcast %3 : vector<1x32xf32> to vector<8x32xf32>
    %5 = arith.addf %2, %4 : vector<8x32xf32>
    %6 = arith.truncf %5 : vector<8x32xf32> to vector<8x32xbf16>
    %c0_5 = arith.constant 0 : index
    %c0_6 = arith.constant 0 : index
    %c0_7 = arith.constant 0 : index
    %7 = vector.load %arg4[%c0_5, %c0_6, %c0_7] : memref<2x32x32xbf16, #tpu.memory_space<vmem>>, vector<1x32x32xbf16>
    %8 = vector.shape_cast %7 : vector<1x32x32xbf16> to vector<32x32xbf16>
    %cst_8 = arith.constant dense<0.000000e+00> : vector<8x32xf32>
    %9 = tpu.matmul %6, %8, %cst_8 {dimension_numbers = #tpu.dot_dimension_numbers<[1], [0], [0], [1], [0, 0, 1, 1], [], []>} : vector<8x32xbf16>, vector<32x32xbf16>, vector<8x32xf32> -> vector<8x32xf32>
    %c0_9 = arith.constant 0 : index
    %c0_10 = arith.constant 0 : index
    %c0_11 = arith.constant 0 : index
    %10 = vector.load %arg5[%c0_9, %c0_10, %c0_11] : memref<2x1x32xf32, #tpu.memory_space<vmem>>, vector<1x1x32xf32>
    %11 = vector.shape_cast %10 : vector<1x1x32xf32> to vector<1x32xf32>
    %12 = vector.broadcast %11 : vector<1x32xf32> to vector<8x32xf32>
    %13 = arith.addf %9, %12 : vector<8x32xf32>
    %14 = arith.addf %5, %13 : vector<8x32xf32>
    %c0_12 = arith.constant 0 : index
    %c0_13 = arith.constant 0 : index
    %c0_14 = arith.constant 0 : index
    %15 = vector.load %arg6[%c0_12, %c0_13, %c0_14] : memref<2x1x32xf32, #tpu.memory_space<vmem>>, vector<1x1x32xf32>
    %16 = vector.shape_cast %15 : vector<1x1x32xf32> to vector<1x32xf32>
    %c0_15 = arith.constant 0 : index
    %c0_16 = arith.constant 0 : index
    %c0_17 = arith.constant 0 : index
    %17 = vector.load %arg7[%c0_15, %c0_16, %c0_17] : memref<2x1x32xf32, #tpu.memory_space<vmem>>, vector<1x1x32xf32>
    %18 = vector.shape_cast %17 : vector<1x1x32xf32> to vector<1x32xf32>
    %cst_18 = arith.constant dense<0.000000e+00> : vector<8xf32>
    %19 = vector.multi_reduction <add>, %14, %cst_18 [1] : vector<8x32xf32> to vector<8xf32>
    %20 = vector.shape_cast %19 : vector<8xf32> to vector<8x1xf32>
    %cst_19 = arith.constant 3.200000e+01 : f32
    %21 = vector.broadcast %cst_19 : f32 to vector<8x1xf32>
    %22 = arith.divf %20, %21 : vector<8x1xf32>
    %23 = vector.broadcast %22 : vector<8x1xf32> to vector<8x32xf32>
    %24 = arith.subf %14, %23 : vector<8x32xf32>
    %25 = arith.mulf %24, %24 : vector<8x32xf32>
    %cst_20 = arith.constant dense<0.000000e+00> : vector<8xf32>
    %26 = vector.multi_reduction <add>, %25, %cst_20 [1] : vector<8x32xf32> to vector<8xf32>
    %27 = vector.shape_cast %26 : vector<8xf32> to vector<8x1xf32>
    %cst_21 = arith.constant 3.200000e+01 : f32
    %28 = vector.broadcast %cst_21 : f32 to vector<8x1xf32>
    %29 = arith.divf %27, %28 : vector<8x1xf32>
    %cst_22 = arith.constant 9.99999974E-6 : f32
    %30 = vector.broadcast %cst_22 : f32 to vector<8x1xf32>
    %31 = arith.addf %29, %30 : vector<8x1xf32>
    %32 = math.rsqrt %31 : vector<8x1xf32>
    %33 = vector.broadcast %32 : vector<8x1xf32> to vector<8x32xf32>
    %34 = arith.mulf %24, %33 : vector<8x32xf32>
    %35 = vector.broadcast %16 : vector<1x32xf32> to vector<8x32xf32>
    %36 = arith.mulf %34, %35 : vector<8x32xf32>
    %37 = vector.broadcast %18 : vector<1x32xf32> to vector<8x32xf32>
    %38 = arith.addf %36, %37 : vector<8x32xf32>
    %39 = arith.truncf %38 : vector<8x32xf32> to vector<8x32xbf16>
    %c0_23 = arith.constant 0 : index
    %c0_24 = arith.constant 0 : index
    %c0_25 = arith.constant 0 : index
    %40 = vector.load %arg8[%c0_23, %c0_24, %c0_25] : memref<2x32x128xbf16, #tpu.memory_space<vmem>>, vector<1x32x128xbf16>
    %41 = vector.shape_cast %40 : vector<1x32x128xbf16> to vector<32x128xbf16>
    %cst_26 = arith.constant dense<0.000000e+00> : vector<8x128xf32>
    %42 = tpu.matmul %39, %41, %cst_26 {dimension_numbers = #tpu.dot_dimension_numbers<[1], [0], [0], [1], [0, 0, 1, 1], [], []>} : vector<8x32xbf16>, vector<32x128xbf16>, vector<8x128xf32> -> vector<8x128xf32>
    %c0_27 = arith.constant 0 : index
    %c0_28 = arith.constant 0 : index
    %c0_29 = arith.constant 0 : index
    %43 = vector.load %arg9[%c0_27, %c0_28, %c0_29] : memref<2x1x128xf32, #tpu.memory_space<vmem>>, vector<1x1x128xf32>
    %44 = vector.shape_cast %43 : vector<1x1x128xf32> to vector<1x128xf32>
    %45 = vector.broadcast %44 : vector<1x128xf32> to vector<8x128xf32>
    %46 = arith.addf %42, %45 : vector<8x128xf32>
    %cst_30 = arith.constant 0.000000e+00 : f32
    %47 = vector.broadcast %cst_30 : f32 to vector<8x128xf32>
    %48 = arith.maximumf %46, %47 : vector<8x128xf32>
    %49 = arith.truncf %48 : vector<8x128xf32> to vector<8x128xbf16>
    %c0_31 = arith.constant 0 : index
    %c0_32 = arith.constant 0 : index
    %c0_33 = arith.constant 0 : index
    %50 = vector.load %arg10[%c0_31, %c0_32, %c0_33] : memref<2x128x32xbf16, #tpu.memory_space<vmem>>, vector<1x128x32xbf16>
    %51 = vector.shape_cast %50 : vector<1x128x32xbf16> to vector<128x32xbf16>
    %cst_34 = arith.constant dense<0.000000e+00> : vector<8x32xf32>
    %52 = tpu.matmul %49, %51, %cst_34 {dimension_numbers = #tpu.dot_dimension_numbers<[1], [0], [0], [1], [0, 0, 1, 1], [], []>} : vector<8x128xbf16>, vector<128x32xbf16>, vector<8x32xf32> -> vector<8x32xf32>
    %c0_35 = arith.constant 0 : index
    %c0_36 = arith.constant 0 : index
    %c0_37 = arith.constant 0 : index
    %53 = vector.load %arg11[%c0_35, %c0_36, %c0_37] : memref<2x1x32xf32, #tpu.memory_space<vmem>>, vector<1x1x32xf32>
    %54 = vector.shape_cast %53 : vector<1x1x32xf32> to vector<1x32xf32>
    %55 = vector.broadcast %54 : vector<1x32xf32> to vector<8x32xf32>
    %56 = arith.addf %52, %55 : vector<8x32xf32>
    %57 = arith.addf %38, %56 : vector<8x32xf32>
    %c0_38 = arith.constant 0 : index
    %c0_39 = arith.constant 0 : index
    %c0_40 = arith.constant 0 : index
    %58 = vector.load %arg12[%c0_38, %c0_39, %c0_40] : memref<2x1x32xf32, #tpu.memory_space<vmem>>, vector<1x1x32xf32>
    %59 = vector.shape_cast %58 : vector<1x1x32xf32> to vector<1x32xf32>
    %c0_41 = arith.constant 0 : index
    %c0_42 = arith.constant 0 : index
    %c0_43 = arith.constant 0 : index
    %60 = vector.load %arg13[%c0_41, %c0_42, %c0_43] : memref<2x1x32xf32, #tpu.memory_space<vmem>>, vector<1x1x32xf32>
    %61 = vector.shape_cast %60 : vector<1x1x32xf32> to vector<1x32xf32>
    %cst_44 = arith.constant dense<0.000000e+00> : vector<8xf32>
    %62 = vector.multi_reduction <add>, %57, %cst_44 [1] : vector<8x32xf32> to vector<8xf32>
    %63 = vector.shape_cast %62 : vector<8xf32> to vector<8x1xf32>
    %cst_45 = arith.constant 3.200000e+01 : f32
    %64 = vector.broadcast %cst_45 : f32 to vector<8x1xf32>
    %65 = arith.divf %63, %64 : vector<8x1xf32>
    %66 = vector.broadcast %65 : vector<8x1xf32> to vector<8x32xf32>
    %67 = arith.subf %57, %66 : vector<8x32xf32>
    %68 = arith.mulf %67, %67 : vector<8x32xf32>
    %cst_46 = arith.constant dense<0.000000e+00> : vector<8xf32>
    %69 = vector.multi_reduction <add>, %68, %cst_46 [1] : vector<8x32xf32> to vector<8xf32>
    %70 = vector.shape_cast %69 : vector<8xf32> to vector<8x1xf32>
    %cst_47 = arith.constant 3.200000e+01 : f32
    %71 = vector.broadcast %cst_47 : f32 to vector<8x1xf32>
    %72 = arith.divf %70, %71 : vector<8x1xf32>
    %cst_48 = arith.constant 9.99999974E-6 : f32
    %73 = vector.broadcast %cst_48 : f32 to vector<8x1xf32>
    %74 = arith.addf %72, %73 : vector<8x1xf32>
    %75 = math.rsqrt %74 : vector<8x1xf32>
    %76 = vector.broadcast %75 : vector<8x1xf32> to vector<8x32xf32>
    %77 = arith.mulf %67, %76 : vector<8x32xf32>
    %78 = vector.broadcast %59 : vector<1x32xf32> to vector<8x32xf32>
    %79 = arith.mulf %77, %78 : vector<8x32xf32>
    %80 = vector.broadcast %61 : vector<1x32xf32> to vector<8x32xf32>
    %81 = arith.addf %79, %80 : vector<8x32xf32>
    %82 = arith.truncf %81 : vector<8x32xf32> to vector<8x32xbf16>
    %c1 = arith.constant 1 : index
    %c0_49 = arith.constant 0 : index
    %c0_50 = arith.constant 0 : index
    %83 = vector.load %arg4[%c1, %c0_49, %c0_50] : memref<2x32x32xbf16, #tpu.memory_space<vmem>>, vector<1x32x32xbf16>
    %84 = vector.shape_cast %83 : vector<1x32x32xbf16> to vector<32x32xbf16>
    %cst_51 = arith.constant dense<0.000000e+00> : vector<8x32xf32>
    %85 = tpu.matmul %82, %84, %cst_51 {dimension_numbers = #tpu.dot_dimension_numbers<[1], [0], [0], [1], [0, 0, 1, 1], [], []>} : vector<8x32xbf16>, vector<32x32xbf16>, vector<8x32xf32> -> vector<8x32xf32>
    %c1_52 = arith.constant 1 : index
    %c0_53 = arith.constant 0 : index
    %c0_54 = arith.constant 0 : index
    %86 = vector.load %arg5[%c1_52, %c0_53, %c0_54] : memref<2x1x32xf32, #tpu.memory_space<vmem>>, vector<1x1x32xf32>
    %87 = vector.shape_cast %86 : vector<1x1x32xf32> to vector<1x32xf32>
    %88 = vector.broadcast %87 : vector<1x32xf32> to vector<8x32xf32>
    %89 = arith.addf %85, %88 : vector<8x32xf32>
    %90 = arith.addf %81, %89 : vector<8x32xf32>
    %c1_55 = arith.constant 1 : index
    %c0_56 = arith.constant 0 : index
    %c0_57 = arith.constant 0 : index
    %91 = vector.load %arg6[%c1_55, %c0_56, %c0_57] : memref<2x1x32xf32, #tpu.memory_space<vmem>>, vector<1x1x32xf32>
    %92 = vector.shape_cast %91 : vector<1x1x32xf32> to vector<1x32xf32>
    %c1_58 = arith.constant 1 : index
    %c0_59 = arith.constant 0 : index
    %c0_60 = arith.constant 0 : index
    %93 = vector.load %arg7[%c1_58, %c0_59, %c0_60] : memref<2x1x32xf32, #tpu.memory_space<vmem>>, vector<1x1x32xf32>
    %94 = vector.shape_cast %93 : vector<1x1x32xf32> to vector<1x32xf32>
    %cst_61 = arith.constant dense<0.000000e+00> : vector<8xf32>
    %95 = vector.multi_reduction <add>, %90, %cst_61 [1] : vector<8x32xf32> to vector<8xf32>
    %96 = vector.shape_cast %95 : vector<8xf32> to vector<8x1xf32>
    %cst_62 = arith.constant 3.200000e+01 : f32
    %97 = vector.broadcast %cst_62 : f32 to vector<8x1xf32>
    %98 = arith.divf %96, %97 : vector<8x1xf32>
    %99 = vector.broadcast %98 : vector<8x1xf32> to vector<8x32xf32>
    %100 = arith.subf %90, %99 : vector<8x32xf32>
    %101 = arith.mulf %100, %100 : vector<8x32xf32>
    %cst_63 = arith.constant dense<0.000000e+00> : vector<8xf32>
    %102 = vector.multi_reduction <add>, %101, %cst_63 [1] : vector<8x32xf32> to vector<8xf32>
    %103 = vector.shape_cast %102 : vector<8xf32> to vector<8x1xf32>
    %cst_64 = arith.constant 3.200000e+01 : f32
    %104 = vector.broadcast %cst_64 : f32 to vector<8x1xf32>
    %105 = arith.divf %103, %104 : vector<8x1xf32>
    %cst_65 = arith.constant 9.99999974E-6 : f32
    %106 = vector.broadcast %cst_65 : f32 to vector<8x1xf32>
    %107 = arith.addf %105, %106 : vector<8x1xf32>
    %108 = math.rsqrt %107 : vector<8x1xf32>
    %109 = vector.broadcast %108 : vector<8x1xf32> to vector<8x32xf32>
    %110 = arith.mulf %100, %109 : vector<8x32xf32>
    %111 = vector.broadcast %92 : vector<1x32xf32> to vector<8x32xf32>
    %112 = arith.mulf %110, %111 : vector<8x32xf32>
    %113 = vector.broadcast %94 : vector<1x32xf32> to vector<8x32xf32>
    %114 = arith.addf %112, %113 : vector<8x32xf32>
    %115 = arith.truncf %114 : vector<8x32xf32> to vector<8x32xbf16>
    %c1_66 = arith.constant 1 : index
    %c0_67 = arith.constant 0 : index
    %c0_68 = arith.constant 0 : index
    %116 = vector.load %arg8[%c1_66, %c0_67, %c0_68] : memref<2x32x128xbf16, #tpu.memory_space<vmem>>, vector<1x32x128xbf16>
    %117 = vector.shape_cast %116 : vector<1x32x128xbf16> to vector<32x128xbf16>
    %cst_69 = arith.constant dense<0.000000e+00> : vector<8x128xf32>
    %118 = tpu.matmul %115, %117, %cst_69 {dimension_numbers = #tpu.dot_dimension_numbers<[1], [0], [0], [1], [0, 0, 1, 1], [], []>} : vector<8x32xbf16>, vector<32x128xbf16>, vector<8x128xf32> -> vector<8x128xf32>
    %c1_70 = arith.constant 1 : index
    %c0_71 = arith.constant 0 : index
    %c0_72 = arith.constant 0 : index
    %119 = vector.load %arg9[%c1_70, %c0_71, %c0_72] : memref<2x1x128xf32, #tpu.memory_space<vmem>>, vector<1x1x128xf32>
    %120 = vector.shape_cast %119 : vector<1x1x128xf32> to vector<1x128xf32>
    %121 = vector.broadcast %120 : vector<1x128xf32> to vector<8x128xf32>
    %122 = arith.addf %118, %121 : vector<8x128xf32>
    %cst_73 = arith.constant 0.000000e+00 : f32
    %123 = vector.broadcast %cst_73 : f32 to vector<8x128xf32>
    %124 = arith.maximumf %122, %123 : vector<8x128xf32>
    %125 = arith.truncf %124 : vector<8x128xf32> to vector<8x128xbf16>
    %c1_74 = arith.constant 1 : index
    %c0_75 = arith.constant 0 : index
    %c0_76 = arith.constant 0 : index
    %126 = vector.load %arg10[%c1_74, %c0_75, %c0_76] : memref<2x128x32xbf16, #tpu.memory_space<vmem>>, vector<1x128x32xbf16>
    %127 = vector.shape_cast %126 : vector<1x128x32xbf16> to vector<128x32xbf16>
    %cst_77 = arith.constant dense<0.000000e+00> : vector<8x32xf32>
    %128 = tpu.matmul %125, %127, %cst_77 {dimension_numbers = #tpu.dot_dimension_numbers<[1], [0], [0], [1], [0, 0, 1, 1], [], []>} : vector<8x128xbf16>, vector<128x32xbf16>, vector<8x32xf32> -> vector<8x32xf32>
    %c1_78 = arith.constant 1 : index
    %c0_79 = arith.constant 0 : index
    %c0_80 = arith.constant 0 : index
    %129 = vector.load %arg11[%c1_78, %c0_79, %c0_80] : memref<2x1x32xf32, #tpu.memory_space<vmem>>, vector<1x1x32xf32>
    %130 = vector.shape_cast %129 : vector<1x1x32xf32> to vector<1x32xf32>
    %131 = vector.broadcast %130 : vector<1x32xf32> to vector<8x32xf32>
    %132 = arith.addf %128, %131 : vector<8x32xf32>
    %133 = arith.addf %114, %132 : vector<8x32xf32>
    %c1_81 = arith.constant 1 : index
    %c0_82 = arith.constant 0 : index
    %c0_83 = arith.constant 0 : index
    %134 = vector.load %arg12[%c1_81, %c0_82, %c0_83] : memref<2x1x32xf32, #tpu.memory_space<vmem>>, vector<1x1x32xf32>
    %135 = vector.shape_cast %134 : vector<1x1x32xf32> to vector<1x32xf32>
    %c1_84 = arith.constant 1 : index
    %c0_85 = arith.constant 0 : index
    %c0_86 = arith.constant 0 : index
    %136 = vector.load %arg13[%c1_84, %c0_85, %c0_86] : memref<2x1x32xf32, #tpu.memory_space<vmem>>, vector<1x1x32xf32>
    %137 = vector.shape_cast %136 : vector<1x1x32xf32> to vector<1x32xf32>
    %cst_87 = arith.constant dense<0.000000e+00> : vector<8xf32>
    %138 = vector.multi_reduction <add>, %133, %cst_87 [1] : vector<8x32xf32> to vector<8xf32>
    %139 = vector.shape_cast %138 : vector<8xf32> to vector<8x1xf32>
    %cst_88 = arith.constant 3.200000e+01 : f32
    %140 = vector.broadcast %cst_88 : f32 to vector<8x1xf32>
    %141 = arith.divf %139, %140 : vector<8x1xf32>
    %142 = vector.broadcast %141 : vector<8x1xf32> to vector<8x32xf32>
    %143 = arith.subf %133, %142 : vector<8x32xf32>
    %144 = arith.mulf %143, %143 : vector<8x32xf32>
    %cst_89 = arith.constant dense<0.000000e+00> : vector<8xf32>
    %145 = vector.multi_reduction <add>, %144, %cst_89 [1] : vector<8x32xf32> to vector<8xf32>
    %146 = vector.shape_cast %145 : vector<8xf32> to vector<8x1xf32>
    %cst_90 = arith.constant 3.200000e+01 : f32
    %147 = vector.broadcast %cst_90 : f32 to vector<8x1xf32>
    %148 = arith.divf %146, %147 : vector<8x1xf32>
    %cst_91 = arith.constant 9.99999974E-6 : f32
    %149 = vector.broadcast %cst_91 : f32 to vector<8x1xf32>
    %150 = arith.addf %148, %149 : vector<8x1xf32>
    %151 = math.rsqrt %150 : vector<8x1xf32>
    %152 = vector.broadcast %151 : vector<8x1xf32> to vector<8x32xf32>
    %153 = arith.mulf %143, %152 : vector<8x32xf32>
    %154 = vector.broadcast %135 : vector<1x32xf32> to vector<8x32xf32>
    %155 = arith.mulf %153, %154 : vector<8x32xf32>
    %156 = vector.broadcast %137 : vector<1x32xf32> to vector<8x32xf32>
    %157 = arith.addf %155, %156 : vector<8x32xf32>
    %158 = arith.truncf %157 : vector<8x32xf32> to vector<8x32xbf16>
    %c0_92 = arith.constant 0 : index
    %c0_93 = arith.constant 0 : index
    %159 = vector.load %arg14[%c0_92, %c0_93] : memref<32x48xbf16, #tpu.memory_space<vmem>>, vector<32x48xbf16>
    %cst_94 = arith.constant dense<0.000000e+00> : vector<8x48xf32>
    %160 = tpu.matmul %158, %159, %cst_94 {dimension_numbers = #tpu.dot_dimension_numbers<[1], [0], [0], [1], [0, 0, 1, 1], [], []>} : vector<8x32xbf16>, vector<32x48xbf16>, vector<8x48xf32> -> vector<8x48xf32>
    %c0_95 = arith.constant 0 : index
    %c0_96 = arith.constant 0 : index
    %161 = vector.load %arg15[%c0_95, %c0_96] : memref<1x48xf32, #tpu.memory_space<vmem>>, vector<1x48xf32>
    %162 = vector.broadcast %161 : vector<1x48xf32> to vector<8x48xf32>
    %163 = arith.addf %160, %162 : vector<8x48xf32>
    %cst_97 = arith.constant 0.000000e+00 : f32
    %164 = vector.broadcast %cst_97 : f32 to vector<8x48xf32>
    %165 = arith.maximumf %163, %164 : vector<8x48xf32>
    %166 = arith.truncf %165 : vector<8x48xf32> to vector<8x48xbf16>
    %c0_98 = arith.constant 0 : index
    %c0_99 = arith.constant 0 : index
    %167 = vector.load %arg16[%c0_98, %c0_99] : memref<48x128xbf16, #tpu.memory_space<vmem>>, vector<48x128xbf16>
    %cst_100 = arith.constant dense<0.000000e+00> : vector<8x128xf32>
    %168 = tpu.matmul %166, %167, %cst_100 {dimension_numbers = #tpu.dot_dimension_numbers<[1], [0], [0], [1], [0, 0, 1, 1], [], []>} : vector<8x48xbf16>, vector<48x128xbf16>, vector<8x128xf32> -> vector<8x128xf32>
    %c0_101 = arith.constant 0 : index
    %c0_102 = arith.constant 0 : index
    %169 = vector.load %arg17[%c0_101, %c0_102] : memref<1x128xf32, #tpu.memory_space<vmem>>, vector<1x128xf32>
    %170 = vector.broadcast %169 : vector<1x128xf32> to vector<8x128xf32>
    %171 = arith.addf %168, %170 : vector<8x128xf32>
    %172 = tpu.iota {dimensions = array<i32: 1>} : vector<8x128xi32>
    %c8_i32 = arith.constant 8 : i32
    %173 = vector.broadcast %c8_i32 : i32 to vector<8x128xi32>
    %174 = arith.cmpi slt, %172, %173 : vector<8x128xi32>
    %175 = arith.negf %171 : vector<8x128xf32>
    %176 = math.exp %175 : vector<8x128xf32>
    %cst_103 = arith.constant 1.000000e+00 : f32
    %177 = vector.broadcast %cst_103 : f32 to vector<8x128xf32>
    %178 = arith.addf %177, %176 : vector<8x128xf32>
    %179 = arith.divf %177, %178 : vector<8x128xf32>
    %cst_104 = arith.constant 0.000000e+00 : f32
    %180 = vector.broadcast %cst_104 : f32 to vector<8x128xf32>
    %181 = arith.maximumf %171, %180 : vector<8x128xf32>
    %182 = arith.select %174, %179, %181 : vector<8x128xi1>, vector<8x128xf32>
    %c0_105 = arith.constant 0 : index
    %c0_106 = arith.constant 0 : index
    %183 = vector.load %arg18[%c0_105, %c0_106] : memref<8x128xf32, #tpu.memory_space<vmem>>, vector<8x128xf32>
    tpu.vector_store %arg18[%c0_105, %c0_106], %182 {strides = array<i32>} : memref<8x128xf32, #tpu.memory_space<vmem>>, vector<8x128xf32>,
    return
  }
  func.func @transform_0(%arg0: i32) -> (i32, i32) {
    %c0_i32 = arith.constant 0 : i32
    %c0_i32_0 = arith.constant 0 : i32
    return %arg0, %c0_i32 : i32, i32
  }
  func.func @transform_1(%arg0: i32) -> (i32, i32) {
    %c0_i32 = arith.constant 0 : i32
    %c0_i32_0 = arith.constant 0 : i32
    %c0_i32_1 = arith.constant 0 : i32
    return %c0_i32, %c0_i32_0 : i32, i32
  }
  func.func @transform_2(%arg0: i32) -> (i32, i32) {
    %c0_i32 = arith.constant 0 : i32
    %c0_i32_0 = arith.constant 0 : i32
    %c0_i32_1 = arith.constant 0 : i32
    return %c0_i32, %c0_i32_0 : i32, i32
  }
  func.func @transform_3(%arg0: i32) -> (i32, i32, i32) {
    %c0_i32 = arith.constant 0 : i32
    %c0_i32_0 = arith.constant 0 : i32
    %c0_i32_1 = arith.constant 0 : i32
    %c0_i32_2 = arith.constant 0 : i32
    return %c0_i32, %c0_i32_0, %c0_i32_1 : i32, i32, i32
  }
  func.func @transform_4(%arg0: i32) -> (i32, i32, i32) {
    %c0_i32 = arith.constant 0 : i32
    %c0_i32_0 = arith.constant 0 : i32
    %c0_i32_1 = arith.constant 0 : i32
    %c0_i32_2 = arith.constant 0 : i32
    return %c0_i32, %c0_i32_0, %c0_i32_1 : i32, i32, i32
  }
  func.func @transform_5(%arg0: i32) -> (i32, i32, i32) {
    %c0_i32 = arith.constant 0 : i32
    %c0_i32_0 = arith.constant 0 : i32
    %c0_i32_1 = arith.constant 0 : i32
    %c0_i32_2 = arith.constant 0 : i32
    return %c0_i32, %c0_i32_0, %c0_i32_1 : i32, i32, i32
  }
  func.func @transform_6(%arg0: i32) -> (i32, i32, i32) {
    %c0_i32 = arith.constant 0 : i32
    %c0_i32_0 = arith.constant 0 : i32
    %c0_i32_1 = arith.constant 0 : i32
    %c0_i32_2 = arith.constant 0 : i32
    return %c0_i32, %c0_i32_0, %c0_i32_1 : i32, i32, i32
  }
  func.func @transform_7(%arg0: i32) -> (i32, i32, i32) {
    %c0_i32 = arith.constant 0 : i32
    %c0_i32_0 = arith.constant 0 : i32
    %c0_i32_1 = arith.constant 0 : i32
    %c0_i32_2 = arith.constant 0 : i32
    return %c0_i32, %c0_i32_0, %c0_i32_1 : i32, i32, i32
  }
  func.func @transform_8(%arg0: i32) -> (i32, i32, i32) {
    %c0_i32 = arith.constant 0 : i32
    %c0_i32_0 = arith.constant 0 : i32
    %c0_i32_1 = arith.constant 0 : i32
    %c0_i32_2 = arith.constant 0 : i32
    return %c0_i32, %c0_i32_0, %c0_i32_1 : i32, i32, i32
  }
  func.func @transform_9(%arg0: i32) -> (i32, i32, i32) {
    %c0_i32 = arith.constant 0 : i32
    %c0_i32_0 = arith.constant 0 : i32
    %c0_i32_1 = arith.constant 0 : i32
    %c0_i32_2 = arith.constant 0 : i32
    return %c0_i32, %c0_i32_0, %c0_i32_1 : i32, i32, i32
  }
  func.func @transform_10(%arg0: i32) -> (i32, i32, i32) {
    %c0_i32 = arith.constant 0 : i32
    %c0_i32_0 = arith.constant 0 : i32
    %c0_i32_1 = arith.constant 0 : i32
    %c0_i32_2 = arith.constant 0 : i32
    return %c0_i32, %c0_i32_0, %c0_i32_1 : i32, i32, i32
  }
  func.func @transform_11(%arg0: i32) -> (i32, i32, i32) {
    %c0_i32 = arith.constant 0 : i32
    %c0_i32_0 = arith.constant 0 : i32
    %c0_i32_1 = arith.constant 0 : i32
    %c0_i32_2 = arith.constant 0 : i32
    return %c0_i32, %c0_i32_0, %c0_i32_1 : i32, i32, i32
  }
  func.func @transform_12(%arg0: i32) -> (i32, i32, i32) {
    %c0_i32 = arith.constant 0 : i32
    %c0_i32_0 = arith.constant 0 : i32
    %c0_i32_1 = arith.constant 0 : i32
    %c0_i32_2 = arith.constant 0 : i32
    return %c0_i32, %c0_i32_0, %c0_i32_1 : i32, i32, i32
  }
  func.func @transform_13(%arg0: i32) -> (i32, i32) {
    %c0_i32 = arith.constant 0 : i32
    %c0_i32_0 = arith.constant 0 : i32
    %c0_i32_1 = arith.constant 0 : i32
    return %c0_i32, %c0_i32_0 : i32, i32
  }
  func.func @transform_14(%arg0: i32) -> (i32, i32) {
    %c0_i32 = arith.constant 0 : i32
    %c0_i32_0 = arith.constant 0 : i32
    %c0_i32_1 = arith.constant 0 : i32
    return %c0_i32, %c0_i32_0 : i32, i32
  }
  func.func @transform_15(%arg0: i32) -> (i32, i32) {
    %c0_i32 = arith.constant 0 : i32
    %c0_i32_0 = arith.constant 0 : i32
    %c0_i32_1 = arith.constant 0 : i32
    return %c0_i32, %c0_i32_0 : i32, i32
  }
  func.func @transform_16(%arg0: i32) -> (i32, i32) {
    %c0_i32 = arith.constant 0 : i32
    %c0_i32_0 = arith.constant 0 : i32
    %c0_i32_1 = arith.constant 0 : i32
    return %c0_i32, %c0_i32_0 : i32, i32
  }
  func.func @transform_17(%arg0: i32) -> (i32, i32) {
    %c0_i32 = arith.constant 0 : i32
    %c0_i32_0 = arith.constant 0 : i32
    return %arg0, %c0_i32 : i32, i32
  }
}

module attributes {stable_mosaic.version = 11 : i64} {
  func.func @forward_kernel(%arg0: i32, %arg1: memref<8x16xbf16, #tpu.memory_space<vmem>>, %arg2: memref<16x32xbf16, #tpu.memory_space<vmem>>, %arg3: memref<1x32xf32, #tpu.memory_space<vmem>>, %arg4: memref<2x32x32xbf16, #tpu.memory_space<vmem>>, %arg5: memref<2x1x32xf32, #tpu.memory_space<vmem>>, %arg6: memref<2x1x32xf32, #tpu.memory_space<vmem>>, %arg7: memref<2x1x32xf32, #tpu.memory_space<vmem>>, %arg8: memref<2x32x128xbf16, #tpu.memory_space<vmem>>, %arg9: memref<2x1x128xf32, #tpu.memory_space<vmem>>, %arg10: memref<2x128x32xbf16, #tpu.memory_space<vmem>>, %arg11: memref<2x1x32xf32, #tpu.memory_space<vmem>>, %arg12: memref<2x1x32xf32, #tpu.memory_space<vmem>>, %arg13: memref<2x1x32xf32, #tpu.memory_space<vmem>>, %arg14: memref<32x48xbf16, #tpu.memory_space<vmem>>, %arg15: memref<1x48xf32, #tpu.memory_space<vmem>>, %arg16: memref<48x128xbf16, #tpu.memory_space<vmem>>, %arg17: memref<1x128xf32, #tpu.memory_space<vmem>>, %arg18: memref<8x128xf32, #tpu.memory_space<vmem>>) attributes {dimension_semantics = [#tpu.dimension_semantics<parallel>], iteration_bounds = array<i64: 1>, scalar_prefetch = 0 : i64, scratch_operands = 0 : i64, tpu.core_type = #tpu.core_type<tc>, window_params = [{transform_indices = @transform_0, window_bounds = array<i64: 8, 16>}, {pipeline_mode = #tpu.pipeline_mode<synchronous>, transform_indices = @transform_1, window_bounds = array<i64: 16, 32>}, {pipeline_mode = #tpu.pipeline_mode<synchronous>, transform_indices = @transform_2, window_bounds = array<i64: 1, 32>}, {pipeline_mode = #tpu.pipeline_mode<synchronous>, transform_indices = @transform_3, window_bounds = array<i64: 2, 32, 32>}, {pipeline_mode = #tpu.pipeline_mode<synchronous>, transform_indices = @transform_4, window_bounds = array<i64: 2, 1, 32>}, {pipeline_mode = #tpu.pipeline_mode<synchronous>, transform_indices = @transform_5, window_bounds = array<i64: 2, 1, 32>}, {pipeline_mode = #tpu.pipeline_mode<synchronous>, transform_indices = @transform_6, window_bounds = array<i64: 2, 1, 32>}, {pipeline_mode = #tpu.pipeline_mode<synchronous>, transform_indices = @transform_7, window_bounds = array<i64: 2, 32, 128>}, {pipeline_mode = #tpu.pipeline_mode<synchronous>, transform_indices = @transform_8, window_bounds = array<i64: 2, 1, 128>}, {pipeline_mode = #tpu.pipeline_mode<synchronous>, transform_indices = @transform_9, window_bounds = array<i64: 2, 128, 32>}, {pipeline_mode = #tpu.pipeline_mode<synchronous>, transform_indices = @transform_10, window_bounds = array<i64: 2, 1, 32>}, {pipeline_mode = #tpu.pipeline_mode<synchronous>, transform_indices = @transform_11, window_bounds = array<i64: 2, 1, 32>}, {pipeline_mode = #tpu.pipeline_mode<synchronous>, transform_indices = @transform_12, window_bounds = array<i64: 2, 1, 32>}, {pipeline_mode = #tpu.pipeline_mode<synchronous>, transform_indices = @transform_13, window_bounds = array<i64: 32, 48>}, {pipeline_mode = #tpu.pipeline_mode<synchronous>, transform_indices = @transform_14, window_bounds = array<i64: 1, 48>}, {pipeline_mode = #tpu.pipeline_mode<synchronous>, transform_indices = @transform_15, window_bounds = array<i64: 48, 128>}, {pipeline_mode = #tpu.pipeline_mode<synchronous>, transform_indices = @transform_16, window_bounds = array<i64: 1, 128>}, {transform_indices = @transform_17, window_bounds = array<i64: 8, 128>}]} {
    %c0 = arith.constant 0 : index
    %c0_0 = arith.constant 0 : index
    %0 = vector.load %arg1[%c0, %c0_0] : memref<8x16xbf16, #tpu.memory_space<vmem>>, vector<8x16xbf16>
    %c0_1 = arith.constant 0 : index
    %c0_2 = arith.constant 0 : index
    %1 = vector.load %arg2[%c0_1, %c0_2] : memref<16x32xbf16, #tpu.memory_space<vmem>>, vector<16x32xbf16>
    %cst = arith.constant dense<0.000000e+00> : vector<8x32xf32>
    %2 = tpu.matmul %0, %1, %cst {dimension_numbers = #tpu.dot_dimension_numbers<[1], [0], [0], [1], [0, 0, 1, 1], [], []>} : vector<8x16xbf16>, vector<16x32xbf16>, vector<8x32xf32> -> vector<8x32xf32>
    %c0_3 = arith.constant 0 : index
    %c0_4 = arith.constant 0 : index
    %3 = vector.load %arg3[%c0_3, %c0_4] : memref<1x32xf32, #tpu.memory_space<vmem>>, vector<1x32xf32>
    %4 = vector.broadcast %3 : vector<1x32xf32> to vector<8x32xf32>
    %5 = arith.addf %2, %4 : vector<8x32xf32>
    %6 = arith.truncf %5 : vector<8x32xf32> to vector<8x32xbf16>
    %c0_5 = arith.constant 0 : index
    %c0_6 = arith.constant 0 : index
    %c0_7 = arith.constant 0 : index
    %7 = vector.load %arg4[%c0_5, %c0_6, %c0_7] : memref<2x32x32xbf16, #tpu.memory_space<vmem>>, vector<1x32x32xbf16>
    %8 = vector.shape_cast %7 : vector<1x32x32xbf16> to vector<32x32xbf16>
    %cst_8 = arith.constant dense<0.000000e+00> : vector<8x32xf32>
    %9 = tpu.matmul %6, %8, %cst_8 {dimension_numbers = #tpu.dot_dimension_numbers<[1], [0], [0], [1], [0, 0, 1, 1], [], []>} : vector<8x32xbf16>, vector<32x32xbf16>, vector<8x32xf32> -> vector<8x32xf32>
    %c0_9 = arith.constant 0 : index
    %c0_10 = arith.constant 0 : index
    %c0_11 = arith.constant 0 : index
    %10 = vector.load %arg5[%c0_9, %c0_10, %c0_11] : memref<2x1x32xf32, #tpu.memory_space<vmem>>, vector<1x1x32xf32>
    %11 = vector.shape_cast %10 : vector<1x1x32xf32> to vector<1x32xf32>
    %12 = vector.broadcast %11 : vector<1x32xf32> to vector<8x32xf32>
    %13 = arith.addf %9, %12 : vector<8x32xf32>
    %14 = arith.addf %5, %13 : vector<8x32xf32>
    %c0_12 = arith.constant 0 : index
    %c0_13 = arith.constant 0 : index
    %c0_14 = arith.constant 0 : index
    %15 = vector.load %arg6[%c0_12, %c0_13, %c0_14] : memref<2x1x32xf32, #tpu.memory_space<vmem>>, vector<1x1x32xf32>
    %16 = vector.shape_cast %15 : vector<1x1x32xf32> to vector<1x32xf32>
    %c0_15 = arith.constant 0 : index
    %c0_16 = arith.constant 0 : index
    %c0_17 = arith.constant 0 : index
    %17 = vector.load %arg7[%c0_15, %c0_16, %c0_17] : memref<2x1x32xf32, #tpu.memory_space<vmem>>, vector<1x1x32xf32>
    %18 = vector.shape_cast %17 : vector<1x1x32xf32> to vector<1x32xf32>
    %cst_18 = arith.constant dense<0.000000e+00> : vector<8xf32>
    %19 = vector.multi_reduction <add>, %14, %cst_18 [1] : vector<8x32xf32> to vector<8xf32>
    %20 = vector.shape_cast %19 : vector<8xf32> to vector<8x1xf32>
    %cst_19 = arith.constant 3.200000e+01 : f32
    %21 = vector.broadcast %cst_19 : f32 to vector<8x1xf32>
    %22 = arith.divf %20, %21 : vector<8x1xf32>
    %23 = vector.broadcast %22 : vector<8x1xf32> to vector<8x32xf32>
    %24 = arith.subf %14, %23 : vector<8x32xf32>
    %25 = arith.mulf %24, %24 : vector<8x32xf32>
    %cst_20 = arith.constant dense<0.000000e+00> : vector<8xf32>
    %26 = vector.multi_reduction <add>, %25, %cst_20 [1] : vector<8x32xf32> to vector<8xf32>
    %27 = vector.shape_cast %26 : vector<8xf32> to vector<8x1xf32>
    %cst_21 = arith.constant 3.200000e+01 : f32
    %28 = vector.broadcast %cst_21 : f32 to vector<8x1xf32>
    %29 = arith.divf %27, %28 : vector<8x1xf32>
    %cst_22 = arith.constant 9.99999974E-6 : f32
    %30 = vector.broadcast %cst_22 : f32 to vector<8x1xf32>
    %31 = arith.addf %29, %30 : vector<8x1xf32>
    %32 = math.rsqrt %31 : vector<8x1xf32>
    %33 = vector.broadcast %32 : vector<8x1xf32> to vector<8x32xf32>
    %34 = arith.mulf %24, %33 : vector<8x32xf32>
    %35 = vector.broadcast %16 : vector<1x32xf32> to vector<8x32xf32>
    %36 = arith.mulf %34, %35 : vector<8x32xf32>
    %37 = vector.broadcast %18 : vector<1x32xf32> to vector<8x32xf32>
    %38 = arith.addf %36, %37 : vector<8x32xf32>
    %39 = arith.truncf %38 : vector<8x32xf32> to vector<8x32xbf16>
    %c0_23 = arith.constant 0 : index
    %c0_24 = arith.constant 0 : index
    %c0_25 = arith.constant 0 : index
    %40 = vector.load %arg8[%c0_23, %c0_24, %c0_25] : memref<2x32x128xbf16, #tpu.memory_space<vmem>>, vector<1x32x128xbf16>
    %41 = vector.shape_cast %40 : vector<1x32x128xbf16> to vector<32x128xbf16>
    %cst_26 = arith.constant dense<0.000000e+00> : vector<8x128xf32>
    %42 = tpu.matmul %39, %41, %cst_26 {dimension_numbers = #tpu.dot_dimension_numbers<[1], [0], [0], [1], [0, 0, 1, 1], [], []>} : vector<8x32xbf16>, vector<32x128xbf16>, vector<8x128xf32> -> vector<8x128xf32>
    %c0_27 = arith.constant 0 : index
    %c0_28 = arith.constant 0 : index
    %c0_29 = arith.constant 0 : index
    %43 = vector.load %arg9[%c0_27, %c0_28, %c0_29] : memref<2x1x128xf32, #tpu.memory_space<vmem>>, vector<1x1x128xf32>
    %44 = vector.shape_cast %43 : vector<1x1x128xf32> to vector<1x128xf32>
    %45 = vector.broadcast %44 : vector<1x128xf32> to vector<8x128xf32>
    %46 = arith.addf %42, %45 : vector<8x128xf32>
    %cst_30 = arith.constant 0.000000e+00 : f32
    %47 = vector.broadcast %cst_30 : f32 to vector<8x128xf32>
    %48 = arith.maximumf %46, %47 : vector<8x128xf32>
    %49 = arith.truncf %48 : vector<8x128xf32> to vector<8x128xbf16>
    %c0_31 = arith.constant 0 : index
    %c0_32 = arith.constant 0 : index
    %c0_33 = arith.constant 0 : index
    %50 = vector.load %arg10[%c0_31, %c0_32, %c0_33] : memref<2x128x32xbf16, #tpu.memory_space<vmem>>, vector<1x128x32xbf16>
    %51 = vector.shape_cast %50 : vector<1x128x32xbf16> to vector<128x32xbf16>
    %cst_34 = arith.constant dense<0.000000e+00> : vector<8x32xf32>
    %52 = tpu.matmul %49, %51, %cst_34 {dimension_numbers = #tpu.dot_dimension_numbers<[1], [0], [0], [1], [0, 0, 1, 1], [], []>} : vector<8x128xbf16>, vector<128x32xbf16>, vector<8x32xf32> -> vector<8x32xf32>
    %c0_35 = arith.constant 0 : index
    %c0_36 = arith.constant 0 : index
    %c0_37 = arith.constant 0 : index
    %53 = vector.load %arg11[%c0_35, %c0_36, %c0_37] : memref<2x1x32xf32, #tpu.memory_space<vmem>>, vector<1x1x32xf32>
    %54 = vector.shape_cast %53 : vector<1x1x32xf32> to vector<1x32xf32>
    %55 = vector.broadcast %54 : vector<1x32xf32> to vector<8x32xf32>
    %56 = arith.addf %52, %55 : vector<8x32xf32>
    %57 = arith.addf %38, %56 : vector<8x32xf32>
    %c0_38 = arith.constant 0 : index
    %c0_39 = arith.constant 0 : index
    %c0_40 = arith.constant 0 : index
    %58 = vector.load %arg12[%c0_38, %c0_39, %c0_40] : memref<2x1x32xf32, #tpu.memory_space<vmem>>, vector<1x1x32xf32>
    %59 = vector.shape_cast %58 : vector<1x1x32xf32> to vector<1x32xf32>
    %c0_41 = arith.constant 0 : index
    %c0_42 = arith.constant 0 : index
    %c0_43 = arith.constant 0 : index
    %60 = vector.load %arg13[%c0_41, %c0_42, %c0_43] : memref<2x1x32xf32, #tpu.memory_space<vmem>>, vector<1x1x32xf32>
    %61 = vector.shape_cast %60 : vector<1x1x32xf32> to vector<1x32xf32>
    %cst_44 = arith.constant dense<0.000000e+00> : vector<8xf32>
    %62 = vector.multi_reduction <add>, %57, %cst_44 [1] : vector<8x32xf32> to vector<8xf32>
    %63 = vector.shape_cast %62 : vector<8xf32> to vector<8x1xf32>
    %cst_45 = arith.constant 3.200000e+01 : f32
    %64 = vector.broadcast %cst_45 : f32 to vector<8x1xf32>
    %65 = arith.divf %63, %64 : vector<8x1xf32>
    %66 = vector.broadcast %65 : vector<8x1xf32> to vector<8x32xf32>
    %67 = arith.subf %57, %66 : vector<8x32xf32>
    %68 = arith.mulf %67, %67 : vector<8x32xf32>
    %cst_46 = arith.constant dense<0.000000e+00> : vector<8xf32>
    %69 = vector.multi_reduction <add>, %68, %cst_46 [1] : vector<8x32xf32> to vector<8xf32>
    %70 = vector.shape_cast %69 : vector<8xf32> to vector<8x1xf32>
    %cst_47 = arith.constant 3.200000e+01 : f32
    %71 = vector.broadcast %cst_47 : f32 to vector<8x1xf32>
    %72 = arith.divf %70, %71 : vector<8x1xf32>
    %cst_48 = arith.constant 9.99999974E-6 : f32
    %73 = vector.broadcast %cst_48 : f32 to vector<8x1xf32>
    %74 = arith.addf %72, %73 : vector<8x1xf32>
    %75 = math.rsqrt %74 : vector<8x1xf32>
    %76 = vector.broadcast %75 : vector<8x1xf32> to vector<8x32xf32>
    %77 = arith.mulf %67, %76 : vector<8x32xf32>
    %78 = vector.broadcast %59 : vector<1x32xf32> to vector<8x32xf32>
    %79 = arith.mulf %77, %78 : vector<8x32xf32>
    %80 = vector.broadcast %61 : vector<1x32xf32> to vector<8x32xf32>
    %81 = arith.addf %79, %80 : vector<8x32xf32>
    %82 = arith.truncf %81 : vector<8x32xf32> to vector<8x32xbf16>
    %c1 = arith.constant 1 : index
    %c0_49 = arith.constant 0 : index
    %c0_50 = arith.constant 0 : index
    %83 = vector.load %arg4[%c1, %c0_49, %c0_50] : memref<2x32x32xbf16, #tpu.memory_space<vmem>>, vector<1x32x32xbf16>
    %84 = vector.shape_cast %83 : vector<1x32x32xbf16> to vector<32x32xbf16>
    %cst_51 = arith.constant dense<0.000000e+00> : vector<8x32xf32>
    %85 = tpu.matmul %82, %84, %cst_51 {dimension_numbers = #tpu.dot_dimension_numbers<[1], [0], [0], [1], [0, 0, 1, 1], [], []>} : vector<8x32xbf16>, vector<32x32xbf16>, vector<8x32xf32> -> vector<8x32xf32>
    %c1_52 = arith.constant 1 : index
    %c0_53 = arith.constant 0 : index
    %c0_54 = arith.constant 0 : index
    %86 = vector.load %arg5[%c1_52, %c0_53, %c0_54] : memref<2x1x32xf32, #tpu.memory_space<vmem>>, vector<1x1x32xf32>
    %87 = vector.shape_cast %86 : vector<1x1x32xf32> to vector<1x32xf32>
    %88 = vector.broadcast %87 : vector<1x32xf32> to vector<8x32xf32>
    %89 = arith.addf %85, %88 : vector<8x32xf32>
    %90 = arith.addf %81, %89 : vector<8x32xf32>
    %c1_55 = arith.constant 1 : index
    %c0_56 = arith.constant 0 : index
    %c0_57 = arith.constant 0 : index
    %91 = vector.load %arg6[%c1_55, %c0_56, %c0_57] : memref<2x1x32xf32, #tpu.memory_space<vmem>>, vector<1x1x32xf32>
    %92 = vector.shape_cast %91 : vector<1x1x32xf32> to vector<1x32xf32>
    %c1_58 = arith.constant 1 : index
    %c0_59 = arith.constant 0 : index
    %c0_60 = arith.constant 0 : index
    %93 = vector.load %arg7[%c1_58, %c0_59, %c0_60] : memref<2x1x32xf32, #tpu.memory_space<vmem>>, vector<1x1x32xf32>
    %94 = vector.shape_cast %93 : vector<1x1x32xf32> to vector<1x32xf32>
    %cst_61 = arith.constant dense<0.000000e+00> : vector<8xf32>
    %95 = vector.multi_reduction <add>, %90, %cst_61 [1] : vector<8x32xf32> to vector<8xf32>
    %96 = vector.shape_cast %95 : vector<8xf32> to vector<8x1xf32>
    %cst_62 = arith.constant 3.200000e+01 : f32
    %97 = vector.broadcast %cst_62 : f32 to vector<8x1xf32>
    %98 = arith.divf %96, %97 : vector<8x1xf32>
    %99 = vector.broadcast %98 : vector<8x1xf32> to vector<8x32xf32>
    %100 = arith.subf %90, %99 : vector<8x32xf32>
    %101 = arith.mulf %100, %100 : vector<8x32xf32>
    %cst_63 = arith.constant dense<0.000000e+00> : vector<8xf32>
    %102 = vector.multi_reduction <add>, %101, %cst_63 [1] : vector<8x32xf32> to vector<8xf32>
    %103 = vector.shape_cast %102 : vector<8xf32> to vector<8x1xf32>
    %cst_64 = arith.constant 3.200000e+01 : f32
    %104 = vector.broadcast %cst_64 : f32 to vector<8x1xf32>
    %105 = arith.divf %103, %104 : vector<8x1xf32>
    %cst_65 = arith.constant 9.99999974E-6 : f32
    %106 = vector.broadcast %cst_65 : f32 to vector<8x1xf32>
    %107 = arith.addf %105, %106 : vector<8x1xf32>
    %108 = math.rsqrt %107 : vector<8x1xf32>
    %109 = vector.broadcast %108 : vector<8x1xf32> to vector<8x32xf32>
    %110 = arith.mulf %100, %109 : vector<8x32xf32>
    %111 = vector.broadcast %92 : vector<1x32xf32> to vector<8x32xf32>
    %112 = arith.mulf %110, %111 : vector<8x32xf32>
    %113 = vector.broadcast %94 : vector<1x32xf32> to vector<8x32xf32>
    %114 = arith.addf %112, %113 : vector<8x32xf32>
    %115 = arith.truncf %114 : vector<8x32xf32> to vector<8x32xbf16>
    %c1_66 = arith.constant 1 : index
    %c0_67 = arith.constant 0 : index
    %c0_68 = arith.constant 0 : index
    %116 = vector.load %arg8[%c1_66, %c0_67, %c0_68] : memref<2x32x128xbf16, #tpu.memory_space<vmem>>, vector<1x32x128xbf16>
    %117 = vector.shape_cast %116 : vector<1x32x128xbf16> to vector<32x128xbf16>
    %cst_69 = arith.constant dense<0.000000e+00> : vector<8x128xf32>
    %118 = tpu.matmul %115, %117, %cst_69 {dimension_numbers = #tpu.dot_dimension_numbers<[1], [0], [0], [1], [0, 0, 1, 1], [], []>} : vector<8x32xbf16>, vector<32x128xbf16>, vector<8x128xf32> -> vector<8x128xf32>
    %c1_70 = arith.constant 1 : index
    %c0_71 = arith.constant 0 : index
    %c0_72 = arith.constant 0 : index
    %119 = vector.load %arg9[%c1_70, %c0_71, %c0_72] : memref<2x1x128xf32, #tpu.memory_space<vmem>>, vector<1x1x128xf32>
    %120 = vector.shape_cast %119 : vector<1x1x128xf32> to vector<1x128xf32>
    %121 = vector.broadcast %120 : vector<1x128xf32> to vector<8x128xf32>
    %122 = arith.addf %118, %121 : vector<8x128xf32>
    %cst_73 = arith.constant 0.000000e+00 : f32
    %123 = vector.broadcast %cst_73 : f32 to vector<8x128xf32>
    %124 = arith.maximumf %122, %123 : vector<8x128xf32>
    %125 = arith.truncf %124 : vector<8x128xf32> to vector<8x128xbf16>
    %c1_74 = arith.constant 1 : index
    %c0_75 = arith.constant 0 : index
    %c0_76 = arith.constant 0 : index
    %126 = vector.load %arg10[%c1_74, %c0_75, %c0_76] : memref<2x128x32xbf16, #tpu.memory_space<vmem>>, vector<1x128x32xbf16>
    %127 = vector.shape_cast %126 : vector<1x128x32xbf16> to vector<128x32xbf16>
    %cst_77 = arith.constant dense<0.000000e+00> : vector<8x32xf32>
    %128 = tpu.matmul %125, %127, %cst_77 {dimension_numbers = #tpu.dot_dimension_numbers<[1], [0], [0], [1], [0, 0, 1, 1], [], []>} : vector<8x128xbf16>, vector<128x32xbf16>, vector<8x32xf32> -> vector<8x32xf32>
    %c1_78 = arith.constant 1 : index
    %c0_79 = arith.constant 0 : index
    %c0_80 = arith.constant 0 : index
    %129 = vector.load %arg11[%c1_78, %c0_79, %c0_80] : memref<2x1x32xf32, #tpu.memory_space<vmem>>, vector<1x1x32xf32>
    %130 = vector.shape_cast %129 : vector<1x1x32xf32> to vector<1x32xf32>
    %131 = vector.broadcast %130 : vector<1x32xf32> to vector<8x32xf32>
    %132 = arith.addf %128, %131 : vector<8x32xf32>
    %133 = arith.addf %114, %132 : vector<8x32xf32>
    %c1_81 = arith.constant 1 : index
    %c0_82 = arith.constant 0 : index
    %c0_83 = arith.constant 0 : index
    %134 = vector.load %arg12[%c1_81, %c0_82, %c0_83] : memref<2x1x32xf32, #tpu.memory_space<vmem>>, vector<1x1x32xf32>
    %135 = vector.shape_cast %134 : vector<1x1x32xf32> to vector<1x32xf32>
    %c1_84 = arith.constant 1 : index
    %c0_85 = arith.constant 0 : index
    %c0_86 = arith.constant 0 : index
    %136 = vector.load %arg13[%c1_84, %c0_85, %c0_86] : memref<2x1x32xf32, #tpu.memory_space<vmem>>, vector<1x1x32xf32>
    %137 = vector.shape_cast %136 : vector<1x1x32xf32> to vector<1x32xf32>
    %cst_87 = arith.constant dense<0.000000e+00> : vector<8xf32>
    %138 = vector.multi_reduction <add>, %133, %cst_87 [1] : vector<8x32xf32> to vector<8xf32>
    %139 = vector.shape_cast %138 : vector<8xf32> to vector<8x1xf32>
    %cst_88 = arith.constant 3.200000e+01 : f32
    %140 = vector.broadcast %cst_88 : f32 to vector<8x1xf32>
    %141 = arith.divf %139, %140 : vector<8x1xf32>
    %142 = vector.broadcast %141 : vector<8x1xf32> to vector<8x32xf32>
    %143 = arith.subf %133, %142 : vector<8x32xf32>
    %144 = arith.mulf %143, %143 : vector<8x32xf32>
    %cst_89 = arith.constant dense<0.000000e+00> : vector<8xf32>
    %145 = vector.multi_reduction <add>, %144, %cst_89 [1] : vector<8x32xf32> to vector<8xf32>
    %146 = vector.shape_cast %145 : vector<8xf32> to vector<8x1xf32>
    %cst_90 = arith.constant 3.200000e+01 : f32
    %147 = vector.broadcast %cst_90 : f32 to vector<8x1xf32>
    %148 = arith.divf %146, %147 : vector<8x1xf32>
    %cst_91 = arith.constant 9.99999974E-6 : f32
    %149 = vector.broadcast %cst_91 : f32 to vector<8x1xf32>
    %150 = arith.addf %148, %149 : vector<8x1xf32>
    %151 = math.rsqrt %150 : vector<8x1xf32>
    %152 = vector.broadcast %151 : vector<8x1xf32> to vector<8x32xf32>
    %153 = arith.mulf %143, %152 : vector<8x32xf32>
    %154 = vector.broadcast %135 : vector<1x32xf32> to vector<8x32xf32>
    %155 = arith.mulf %153, %154 : vector<8x32xf32>
    %156 = vector.broadcast %137 : vector<1x32xf32> to vector<8x32xf32>
    %157 = arith.addf %155, %156 : vector<8x32xf32>
    %158 = arith.truncf %157 : vector<8x32xf32> to vector<8x32xbf16>
    %c0_92 = arith.constant 0 : index
    %c0_93 = arith.constant 0 : index
    %159 = vector.load %arg14[%c0_92, %c0_93] : memref<32x48xbf16, #tpu.memory_space<vmem>>, vector<32x48xbf16>
    %cst_94 = arith.constant dense<0.000000e+00> : vector<8x48xf32>
    %160 = tpu.matmul %158, %159, %cst_94 {dimension_numbers = #tpu.dot_dimension_numbers<[1], [0], [0], [1], [0, 0, 1, 1], [], []>} : vector<8x32xbf16>, vector<32x48xbf16>, vector<8x48xf32> -> vector<8x48xf32>
    %c0_95 = arith.constant 0 : index
    %c0_96 = arith.constant 0 : index
    %161 = vector.load %arg15[%c0_95, %c0_96] : memref<1x48xf32, #tpu.memory_space<vmem>>, vector<1x48xf32>
    %162 = vector.broadcast %161 : vector<1x48xf32> to vector<8x48xf32>
    %163 = arith.addf %160, %162 : vector<8x48xf32>
    %cst_97 = arith.constant 0.000000e+00 : f32
    %164 = vector.broadcast %cst_97 : f32 to vector<8x48xf32>
    %165 = arith.maximumf %163, %164 : vector<8x48xf32>
    %166 = arith.truncf %165 : vector<8x48xf32> to vector<8x48xbf16>
    %c0_98 = arith.constant 0 : index
    %c0_99 = arith.constant 0 : index
    %167 = vector.load %arg16[%c0_98, %c0_99] : memref<48x128xbf16, #tpu.memory_space<vmem>>, vector<48x128xbf16>
    %cst_100 = arith.constant dense<0.000000e+00> : vector<8x128xf32>
    %168 = tpu.matmul %166, %167, %cst_100 {dimension_numbers = #tpu.dot_dimension_numbers<[1], [0], [0], [1], [0, 0, 1, 1], [], []>} : vector<8x48xbf16>, vector<48x128xbf16>, vector<8x128xf32> -> vector<8x128xf32>
    %c0_101 = arith.constant 0 : index
    %c0_102 = arith.constant 0 : index
    %169 = vector.load %arg17[%c0_101, %c0_102] : memref<1x128xf32, #tpu.memory_space<vmem>>, vector<1x128xf32>
    %170 = vector.broadcast %169 : vector<1x128xf32> to vector<8x128xf32>
    %171 = arith.addf %168, %170 : vector<8x128xf32>
    %172 = tpu.iota {dimensions = array<i32: 1>} : vector<8x128xi32>
    %c8_i32 = arith.constant 8 : i32
    %173 = vector.broadcast %c8_i32 : i32 to vector<8x128xi32>
    %174 = arith.cmpi slt, %172, %173 : vector<8x128xi32>
    %175 = arith.negf %171 : vector<8x128xf32>
    %176 = math.exp %175 : vector<8x128xf32>
    %cst_103 = arith.constant 1.000000e+00 : f32
    %177 = vector.broadcast %cst_103 : f32 to vector<8x128xf32>
    %178 = arith.addf %177, %176 : vector<8x128xf32>
    %179 = arith.divf %177, %178 : vector<8x128xf32>
    %cst_104 = arith.constant 0.000000e+00 : f32
    %180 = vector.broadcast %cst_104 : f32 to vector<8x128xf32>
    %181 = arith.maximumf %171, %180 : vector<8x128xf32>
    %182 = arith.select %174, %179, %181 : vector<8x128xi1>, vector<8x128xf32>
    %c0_105 = arith.constant 0 : index
    %c0_106 = arith.constant 0 : index
    %183 = vector.load %arg18[%c0_105, %c0_106] : memref<8x128xf32, #tpu.memory_space<vmem>>, vector<8x128xf32>
    tpu.vector_store %arg18[%c0_105, %c0_106], %182 {strides = array<i32>} : memref<8x128xf32, #tpu.memory_space<vmem>>, vector<8x128xf32>,
    return
  }
  func.func @transform_0(%arg0: i32) -> (i32, i32) {
    %c0_i32 = arith.constant 0 : i32
    %c0_i32_0 = arith.constant 0 : i32
    return %arg0, %c0_i32 : i32, i32
  }
  func.func @transform_1(%arg0: i32) -> (i32, i32) {
    %c0_i32 = arith.constant 0 : i32
    %c0_i32_0 = arith.constant 0 : i32
    %c0_i32_1 = arith.constant 0 : i32
    return %c0_i32, %c0_i32_0 : i32, i32
  }
  func.func @transform_2(%arg0: i32) -> (i32, i32) {
    %c0_i32 = arith.constant 0 : i32
    %c0_i32_0 = arith.constant 0 : i32
    %c0_i32_1 = arith.constant 0 : i32
    return %c0_i32, %c0_i32_0 : i32, i32
  }
  func.func @transform_3(%arg0: i32) -> (i32, i32, i32) {
    %c0_i32 = arith.constant 0 : i32
    %c0_i32_0 = arith.constant 0 : i32
    %c0_i32_1 = arith.constant 0 : i32
    %c0_i32_2 = arith.constant 0 : i32
    return %c0_i32, %c0_i32_0, %c0_i32_1 : i32, i32, i32
  }
  func.func @transform_4(%arg0: i32) -> (i32, i32, i32) {
    %c0_i32 = arith.constant 0 : i32
    %c0_i32_0 = arith.constant 0 : i32
    %c0_i32_1 = arith.constant 0 : i32
    %c0_i32_2 = arith.constant 0 : i32
    return %c0_i32, %c0_i32_0, %c0_i32_1 : i32, i32, i32
  }
  func.func @transform_5(%arg0: i32) -> (i32, i32, i32) {
    %c0_i32 = arith.constant 0 : i32
    %c0_i32_0 = arith.constant 0 : i32
    %c0_i32_1 = arith.constant 0 : i32
    %c0_i32_2 = arith.constant 0 : i32
    return %c0_i32, %c0_i32_0, %c0_i32_1 : i32, i32, i32
  }
  func.func @transform_6(%arg0: i32) -> (i32, i32, i32) {
    %c0_i32 = arith.constant 0 : i32
    %c0_i32_0 = arith.constant 0 : i32
    %c0_i32_1 = arith.constant 0 : i32
    %c0_i32_2 = arith.constant 0 : i32
    return %c0_i32, %c0_i32_0, %c0_i32_1 : i32, i32, i32
  }
  func.func @transform_7(%arg0: i32) -> (i32, i32, i32) {
    %c0_i32 = arith.constant 0 : i32
    %c0_i32_0 = arith.constant 0 : i32
    %c0_i32_1 = arith.constant 0 : i32
    %c0_i32_2 = arith.constant 0 : i32
    return %c0_i32, %c0_i32_0, %c0_i32_1 : i32, i32, i32
  }
  func.func @transform_8(%arg0: i32) -> (i32, i32, i32) {
    %c0_i32 = arith.constant 0 : i32
    %c0_i32_0 = arith.constant 0 : i32
    %c0_i32_1 = arith.constant 0 : i32
    %c0_i32_2 = arith.constant 0 : i32
    return %c0_i32, %c0_i32_0, %c0_i32_1 : i32, i32, i32
  }
  func.func @transform_9(%arg0: i32) -> (i32, i32, i32) {
    %c0_i32 = arith.constant 0 : i32
    %c0_i32_0 = arith.constant 0 : i32
    %c0_i32_1 = arith.constant 0 : i32
    %c0_i32_2 = arith.constant 0 : i32
    return %c0_i32, %c0_i32_0, %c0_i32_1 : i32, i32, i32
  }
  func.func @transform_10(%arg0: i32) -> (i32, i32, i32) {
    %c0_i32 = arith.constant 0 : i32
    %c0_i32_0 = arith.constant 0 : i32
    %c0_i32_1 = arith.constant 0 : i32
    %c0_i32_2 = arith.constant 0 : i32
    return %c0_i32, %c0_i32_0, %c0_i32_1 : i32, i32, i32
  }
  func.func @transform_11(%arg0: i32) -> (i32, i32, i32) {
    %c0_i32 = arith.constant 0 : i32
    %c0_i32_0 = arith.constant 0 : i32
    %c0_i32_1 = arith.constant 0 : i32
    %c0_i32_2 = arith.constant 0 : i32
    return %c0_i32, %c0_i32_0, %c0_i32_1 : i32, i32, i32
  }
  func.func @transform_12(%arg0: i32) -> (i32, i32, i32) {
    %c0_i32 = arith.constant 0 : i32
    %c0_i32_0 = arith.constant 0 : i32
    %c0_i32_1 = arith.constant 0 : i32
    %c0_i32_2 = arith.constant 0 : i32
    return %c0_i32, %c0_i32_0, %c0_i32_1 : i32, i32, i32
  }
  func.func @transform_13(%arg0: i32) -> (i32, i32) {
    %c0_i32 = arith.constant 0 : i32
    %c0_i32_0 = arith.constant 0 : i32
    %c0_i32_1 = arith.constant 0 : i32
    return %c0_i32, %c0_i32_0 : i32, i32
  }
  func.func @transform_14(%arg0: i32) -> (i32, i32) {
    %c0_i32 = arith.constant 0 : i32
    %c0_i32_0 = arith.constant 0 : i32
    %c0_i32_1 = arith.constant 0 : i32
    return %c0_i32, %c0_i32_0 : i32, i32
  }
  func.func @transform_15(%arg0: i32) -> (i32, i32) {
    %c0_i32 = arith.constant 0 : i32
    %c0_i32_0 = arith.constant 0 : i32
    %c0_i32_1 = arith.constant 0 : i32
    return %c0_i32, %c0_i32_0 : i32, i32
  }
  func.func @transform_16(%arg0: i32) -> (i32, i32) {
    %c0_i32 = arith.constant 0 : i32
    %c0_i32_0 = arith.constant 0 : i32
    %c0_i32_1 = arith.constant 0 : i32
    return %c0_i32, %c0_i32_0 : i32, i32
  }
  func.func @transform_17(%arg0: i32) -> (i32, i32) {
    %c0_i32 = arith.constant 0 : i32
    %c0_i32_0 = arith.constant 0 : i32
    return %arg0, %c0_i32 : i32, i32
  }
}

</mosaic_0001>

<bundles_post_ra>
// kernel: _forward_impl.1
= control target key start
LH: loop header
LB: loop body
LE: loop exit
PB: predicated region body
PF: predicated region fallthrough
CT: control target
= control target key end

     0   :  { %v1168_v0 = vmov 0.0   ;;  %vm1169_vm0 = vmmov 0   ;;  %vm73_vm1 = vcmask 130048   ;;  %vm141_vm2 = vcmask 261120   ;;  %s1468_s1 = inlined_call_operand.vmem [shape: bf16[16,32], index: 1, kind: input, shape index: {}]   ;;  %s1469_s0 = inlined_call_operand.vmem [shape: bf16[8,16], index: 0, kind: input, shape index: {}]   ;;  %s1470_s3 = inlined_call_operand.vmem [shape: bf16[2,32,32], index: 3, kind: input, shape index: {}]   ;;  %s1471_s2 = inlined_call_operand.vmem [shape: f32[1,32], index: 2, kind: input, shape index: {}]   ;;  %s1472_s4 = inlined_call_operand.vmem [shape: f32[2,1,32], index: 4, kind: input, shape index: {}]   ;;  %s1473_s7 = inlined_call_operand.vmem [shape: bf16[2,32,128], index: 7, kind: input, shape index: {}]   ;;  %s1474_s9 = inlined_call_operand.vmem [shape: bf16[2,128,32], index: 9, kind: input, shape index: {}]   ;;  %s1475_s5 = inlined_call_operand.vmem [shape: f32[2,1,32], index: 5, kind: input, shape index: {}]   ;;  %s1476_s6 = inlined_call_operand.vmem [shape: f32[2,1,32], index: 6, kind: input, shape index: {}]   ;;  %s1477_s8 = inlined_call_operand.vmem [shape: f32[2,1,128], index: 8, kind: input, shape index: {}]   ;;  %s1478_s10 = inlined_call_operand.vmem [shape: f32[2,1,32], index: 10, kind: input, shape index: {}]   ;;  %s1479_s11 = inlined_call_operand.vmem [shape: f32[2,1,32], index: 11, kind: input, shape index: {}]   ;;  %s1480_s12 = inlined_call_operand.vmem [shape: f32[2,1,32], index: 12, kind: input, shape index: {}]   ;;  %s1481_s13 = inlined_call_operand.vmem [shape: bf16[32,48], index: 13, kind: input, shape index: {}]   ;;  %s1482_s15 = inlined_call_operand.vmem [shape: bf16[48,128], index: 15, kind: input, shape index: {}]   ;;  %s1483_s14 = inlined_call_operand.vmem [shape: f32[1,48], index: 14, kind: input, shape index: {}]   ;;  %s1484_s16 = inlined_call_operand.vmem [shape: f32[1,128], index: 16, kind: input, shape index: {}]   ;;  %s1485_s17 = inlined_call_operand.vmem [shape: f32[8,128], index: 17, kind: output, shape index: {}]  }
   0x1   :  { %1486 = sst [smem:[#allocation2_spill]] %s1468_s1  ;;  %1028 = vmatprep.subr.bf16.mxu0 %v1168_v0  ;;  %1030 = vmatprep.mubr.msk.bf16.mxu0 %vm1169_vm0, %v1168_v0  ;;  %v1127_v3 = vld [vmem:[%s1470_s3] sm:$0xff]   ;;  %v1128_v4 = vld [vmem:[%s1470_s3 + $0x8] sm:$0xff]   ;;  %v1133_v29 = vld [vmem:[%s1474_s9 + $0x10] sm:$0xff]   ;;  %vm843_vm3 = vcmask 392192  }
   0x2   :  { %1487 = sst [smem:[#allocation3_spill]] %s1469_s0  ;;  %s1488_s26 = sld [smem:[#allocation2_spill]]  ;;  %1034 = vmatprep.subr.bf16.mxu1 %v1168_v0  ;;  %1038 = vmatprep.mubr.msk.bf16.mxu1 %vm1169_vm0, %v1168_v0  ;;  %v903_v5 = vld [vmem:[%s1471_s2] ss:$0 sm:$0xff]  ;;  %v1130_v26 = vld [vmem:[%s1473_s7 + $0x8] sm:$0xff]   ;;  %v1134_v30 = vld [vmem:[%s1474_s9 + $0x18] sm:$0xff]  }
   0x3   :  { %s1489_s29 = sld [smem:[#allocation3_spill]]  ;;  %1035 = vmatpush3.bf16.msra.mxu1 %v1127_v3  ;;  %v906_v12 = vld [vmem:[%s1472_s4] ss:$0 sm:$0xff]  ;;  %v1132_v28 = vld [vmem:[%s1474_s9 + $0x8] sm:$0xff]   ;;  %v1137_v43 = vld [vmem:[%s1474_s9 + $0x30] sm:$0xff]  }
   0x4   :  { %1036 = vmatprep.subr.bf16.mxu1 %v1168_v0  ;;  %v1129_v25 = vld [vmem:[%s1473_s7] sm:$0xff]   ;;  %v1136_v32 = vld [vmem:[%s1474_s9 + $0x28] sm:$0xff]   ;;  %v1138_v44 = vld [vmem:[%s1474_s9 + $0x38] sm:$0xff]  }
   0x5   :  { %v1131_v27 = vld [vmem:[%s1474_s9] sm:$0xff]   ;;  %v1139_v3 = vld [vmem:[%s1470_s3 + $0x10] sm:$0xff]  }
   0x6   :  { %v1135_v31 = vld [vmem:[%s1474_s9 + $0x20] sm:$0xff]  }
   0x7   :  { %1037 = vmatpush3.bf16.msra.mxu1 %v1128_v4  ;;  %v910_v37 = vld [vmem:[%s1475_s5] ss:$0 sm:$0xff]  ;;  %v1140_v4 = vld [vmem:[%s1470_s3 + $0x18] sm:$0xff]  }
   0x8   :  { %v1126_v1 = vld [vmem:[%s1488_s26] sm:$0xff]   ;;  %1050 = vmatprep.subr.bf16.mxu1 %v1168_v0 }
   0x9   :  { %1029 = vmatpush3.bf16.msra.mxu0 %v1126_v1  ;;  %v57_v2 = vld [vmem:[%s1489_s29] sm:$0xf] }
   0xa   :  { %1042 = vmatprep.subr.bf16.mxu0 %v1168_v0  ;;  %v911_v39 = vld [vmem:[%s1476_s6] ss:$0 sm:$0xff] }
   0xb   :  { %v912_v45 = vld [vmem:[%s1477_s8] ss:$0 sm:$0xff] }
   0xc   :  { %1031 = vmatmul.mubr.msk.bf16.vlgmr.msra.gmra.mrb[0].mxu0 %vm73_vm1, %v57_v2  ;;  %v916_v53 = vld [vmem:[%s1478_s10] ss:$0 sm:$0xff] }
   0xd   :  { %1046 = vmatprep.mubr.msk.bf16.mxu0 %vm1169_vm0, %v1168_v0  ;;  %1043 = vmatpush3.bf16.msra.mxu0 %v1129_v25 }
   0xe   :  { %1044 = vmatprep.subr.bf16.mxu0 %v1168_v0 }
  0x11   :  { %1045 = vmatpush3.bf16.msra.mxu0 %v1130_v26 }
  0x12   :  { %1070 = vmatprep.subr.bf16.mxu0 %v1168_v0 }
  0xdf   :  { %v111_v6 = vpop.f32.mrb[0].mxu0 }
  0xe0   :  { %v112_v7 = vadd.f32 %v903_v5, %v111_v6  ;;  %v1032_v8 = vpop.f32.mrb[1].mxu0 }
  0xe1   :  { %v114_v9 = vpop.f32.mrb[2].mxu0 }
  0xe2   :  { %v117_v10 = vpack.c.bf16 %v112_v7, %v112_v7  ;;  %v1033_v11 = vpop.f32.mrb[3].mxu0  ;;  %v925_v9 = vld [vmem:[%s1479_s11] ss:$0 sm:$0xff] }
  0xe3   :  { %v926_v11 = vld [vmem:[%s1480_s12] ss:$0 sm:$0xff] }
  0xe4   :  { %1039 = vmatmul.mubr.msk.bf16.vlgmr.msra.gmra.mrb[0].mxu1 %vm141_vm2, %v117_v10 }
  0xe5   :  { %1066 = vmatprep.mubr.msk.bf16.mxu1 %vm1169_vm0, %v1168_v0  ;;  %1051 = vmatpush3.bf16.msra.mxu1 %v1131_v27 }
  0xe6   :  { %1052 = vmatprep.subr.bf16.mxu1 %v1168_v0 }
  0xe9   :  { %1053 = vmatpush3.bf16.msra.mxu1 %v1132_v28  ;;  %v1141_v28 = vld [vmem:[%s1473_s7 + $0x10] sm:$0xff]  }
  0xea   :  { %1054 = vmatprep.subr.bf16.mxu1 %v1168_v0 }
  0xed   :  { %1055 = vmatpush3.bf16.msra.mxu1 %v1133_v29  ;;  %v1142_v29 = vld [vmem:[%s1473_s7 + $0x18] sm:$0xff]  }
  0xee   :  { %1056 = vmatprep.subr.bf16.mxu1 %v1168_v0 }
  0xf1   :  { %1057 = vmatpush3.bf16.msra.mxu1 %v1134_v30 }
  0xf2   :  { %1058 = vmatprep.subr.bf16.mxu1 %v1168_v0 }
  0xf5   :  { %1059 = vmatpush3.bf16.msra.mxu1 %v1135_v31 }
  0xf6   :  { %1060 = vmatprep.subr.bf16.mxu1 %v1168_v0 }
  0xf9   :  { %1061 = vmatpush3.bf16.msra.mxu1 %v1136_v32 }
  0xfa   :  { %1062 = vmatprep.subr.bf16.mxu1 %v1168_v0 }
  0xfd   :  { %1063 = vmatpush3.bf16.msra.mxu1 %v1137_v43  ;;  %v1146_v43 = vld [vmem:[%s1474_s9 + $0x58] sm:$0xff]  }
  0xfe   :  { %1064 = vmatprep.subr.bf16.mxu1 %v1168_v0 }
 0x101   :  { %1065 = vmatpush3.bf16.msra.mxu1 %v1138_v44  ;;  %v1147_v44 = vld [vmem:[%s1474_s9 + $0x60] sm:$0xff]  }
 0x102   :  { %1106 = vmatprep.subr.bf16.mxu1 %v1168_v0 }
 0x1b7   :  { %v179_v13 = vpop.f32.mrb[0].mxu1 }
 0x1b8   :  { %v180_v14 = vadd.f32 %v906_v12, %v179_v13  ;;  %v1040_v15 = vpop.f32.mrb[1].mxu1 }
 0x1b9   :  { %v182_v16 = vpop.f32.mrb[2].mxu1  ;;  %v932_v15 = vld [vmem:[%s1472_s4 + $0x1] ss:$0 sm:$0xff] }
 0x1ba   :  { %v1041_v17 = vpop.f32.mrb[3].mxu1  ;;  %v185_v18 = vadd.f32 %v180_v14, %v112_v7 }
 0x1bc   :  { %v188_v19 = vsel %vm141_vm2, %v185_v18, 0.0 }
 0x1bd   :  { %189 = vadd.xlane.f32.xlu0 %v188_v19 }
 0x24a   :  { %v190_v20 = vpop.xlane.xlu0 %189 }
 0x24b   :  { %v192_v21 = vmul.f32 0.03125, %v190_v20 }
 0x24d   :  { %v193_v22 = vsub.f32 %v185_v18, %v192_v21 }
 0x24f   :  { %v194_v23 = vmul.f32 %v193_v22, %v193_v22 }
 0x251   :  { %v195_v24 = vsel %vm141_vm2, %v194_v23, 0.0 }
 0x252   :  { %196 = vadd.xlane.f32.xlu0 %v195_v24 }
 0x2df   :  { %v197_v33 = vpop.xlane.xlu0 %196 }
 0x2e0   :  { %v198_v34 = vmul.f32 0.03125, %v197_v33 }
 0x2e2   :  { %v199_v35 = vadd.f32 1e-05, %v198_v34  ;;  %v938_v34 = vld [vmem:[%s1475_s5 + $0x1] ss:$0 sm:$0xff] }
 0x2e4   :  { %1156 = vrsqrt.f32 %v199_v35 }
 0x2ee   :  { %v1157_v36 = vpop.eup %1156 }
 0x2ef   :  { %v201_v38 = vmul.f32 %v1157_v36, %v193_v22  ;;  %v939_v36 = vld [vmem:[%s1476_s6 + $0x1] ss:$0 sm:$0xff] }
 0x2f1   :  { %v208_v40 = vmul.f32 %v910_v37, %v201_v38 }
 0x2f3   :  { %v215_v41 = vadd.f32 %v911_v39, %v208_v40  ;;  %v1143_v39 = vld [vmem:[%s1474_s9 + $0x40] sm:$0xff]  }
 0x2f5   :  { %v216_v42 = vpack.c.bf16 %v215_v41, %v215_v41 }
 0x2f7   :  { %1047 = vmatmul.mubr.msk.bf16.vlgmr.msra.gmra.mrb[4].mxu0 %vm141_vm2, %v216_v42  ;;  %v1145_v42 = vld [vmem:[%s1474_s9 + $0x50] sm:$0xff]  }
 0x2f8   :  { %1074 = vmatprep.mubr.msk.bf16.mxu0 %vm1169_vm0, %v1168_v0  ;;  %1071 = vmatpush3.bf16.msra.mxu0 %v1139_v3 }
 0x2f9   :  { %1072 = vmatprep.subr.bf16.mxu0 %v1168_v0 }
 0x2fc   :  { %1073 = vmatpush3.bf16.msra.mxu0 %v1140_v4 }
 0x2fd   :  { %1078 = vmatprep.subr.bf16.mxu0 %v1168_v0 }
 0x3ca   :  { %v277_v46 = vpop.f32.mrb[4].mxu0 }
 0x3cb   :  { %v278_v47 = vadd.f32 %v912_v45, %v277_v46  ;;  %v1048_v48 = vpop.f32.mrb[5].mxu0  ;;  %v1148_v45 = vld [vmem:[%s1474_s9 + $0x68] sm:$0xff]   ;;  %v1149_v46 = vld [vmem:[%s1474_s9 + $0x70] sm:$0xff]  }
 0x3cc   :  { %v280_v49 = vpop.f32.mrb[6].mxu0  ;;  %v945_v48 = vld [vmem:[%s1477_s8 + $0x1] ss:$0 sm:$0xff] }
 0x3cd   :  { %v283_v50 = vmax.f32 %v278_v47, 0.0  ;;  %v1049_v51 = vpop.f32.mrb[7].mxu0  ;;  %v1150_v47 = vld [vmem:[%s1474_s9 + $0x78] sm:$0xff]  }
 0x3cf   :  { %v284_v52 = vpack.c.bf16 %v283_v50, %v283_v50 }
 0x3d1   :  { %1067 = vmatmul.mubr.bf16.vlgmr.msra.gmra.mrb[4].mxu1 %v284_v52 }
 0x3d2   :  { %1110 = vmatprep.mubr.msk.bf16.mxu1 %vm1169_vm0, %v1168_v0 }
 0x4a4   :  { %v390_v54 = vpop.f32.mrb[4].mxu1 }
 0x4a5   :  { %v391_v55 = vadd.f32 %v916_v53, %v390_v54  ;;  %v1068_v56 = vpop.f32.mrb[5].mxu1 }
 0x4a6   :  { %v393_v57 = vpop.f32.mrb[6].mxu1  ;;  %v966_v56 = vld [vmem:[%s1478_s10 + $0x1] ss:$0 sm:$0xff] }
 0x4a7   :  { %v1069_v58 = vpop.f32.mrb[7].mxu1  ;;  %v396_v59 = vadd.f32 %v391_v55, %v215_v41  ;;  %v1144_v41 = vld [vmem:[%s1474_s9 + $0x48] sm:$0xff]  }
 0x4a9   :  { %v399_v60 = vsel %vm141_vm2, %v396_v59, 0.0 }
 0x4aa   :  { %400 = vadd.xlane.f32.xlu1 %v399_v60 }
 0x537   :  { %v401_v61 = vpop.xlane.xlu1 %400 }
 0x538   :  { %v402_v62 = vmul.f32 0.03125, %v401_v61 }
 0x53a   :  { %v403_v63 = vsub.f32 %v396_v59, %v402_v62 }
 0x53c   :  { %v404_v1 = vmul.f32 %v403_v63, %v403_v63 }
 0x53e   :  { %v405_v2 = vsel %vm141_vm2, %v404_v1, 0.0 }
 0x53f   :  { %406 = vadd.xlane.f32.xlu1 %v405_v2 }
 0x5cc   :  { %v407_v5 = vpop.xlane.xlu1 %406 }
 0x5cd   :  { %v408_v6 = vmul.f32 0.03125, %v407_v5 }
 0x5cf   :  { %v409_v7 = vadd.f32 1e-05, %v408_v6  ;;  %v1151_v6 = vld [vmem:[%s1481_s13] sm:$0xff]  }
 0x5d0   :  { %1107 = vmatpush3.bf16.msra.mxu1 %v1151_v6 }
 0x5d1   :  { %1158 = vrsqrt.f32 %v409_v7  ;;  %1108 = vmatprep.subr.bf16.mxu1 %v1168_v0  ;;  %v1152_v7 = vld [vmem:[%s1481_s13 + $0x8] sm:$0xff]  }
 0x5d4   :  { %1109 = vmatpush3.bf16.msra.mxu1 %v1152_v7 }
 0x5d5   :  { %1114 = vmatprep.subr.bf16.mxu1 %v1168_v0 }
 0x5db   :  { %v1159_v8 = vpop.eup %1158 }
 0x5dc   :  { %v411_v10 = vmul.f32 %v1159_v8, %v403_v63 }
 0x5de   :  { %v418_v12 = vmul.f32 %v925_v9, %v411_v10 }
 0x5e0   :  { %v425_v13 = vadd.f32 %v926_v11, %v418_v12  ;;  %v977_v12 = vld [vmem:[%s1479_s11 + $0x1] ss:$0 sm:$0xff] }
 0x5e2   :  { %v426_v14 = vpack.c.bf16 %v425_v13, %v425_v13 }
 0x5e4   :  { %1075 = vmatmul.mubr.msk.bf16.vlgmr.msra.gmra.mrb[8].mxu0 %vm141_vm2, %v426_v14  ;;  %v978_v14 = vld [vmem:[%s1480_s12 + $0x1] ss:$0 sm:$0xff] }
 0x5e5   :  { %1082 = vmatprep.mubr.msk.bf16.mxu0 %vm1169_vm0, %v1168_v0  ;;  %1079 = vmatpush3.bf16.msra.mxu0 %v1141_v28 }
 0x5e6   :  { %1080 = vmatprep.subr.bf16.mxu0 %v1168_v0 }
 0x5e9   :  { %1081 = vmatpush3.bf16.msra.mxu0 %v1142_v29 }
 0x5ea   :  { %1086 = vmatprep.subr.bf16.mxu0 %v1168_v0 }
 0x6b7   :  { %v489_v16 = vpop.f32.mrb[8].mxu0 }
 0x6b8   :  { %v490_v17 = vadd.f32 %v932_v15, %v489_v16  ;;  %v1076_v18 = vpop.f32.mrb[9].mxu0 }
 0x6b9   :  { %v492_v19 = vpop.f32.mrb[10].mxu0 }
 0x6ba   :  { %v1077_v20 = vpop.f32.mrb[11].mxu0  ;;  %v495_v21 = vadd.f32 %v490_v17, %v425_v13  ;;  %v1153_v17 = vld [vmem:[%s1482_s15] sm:$0xff]   ;;  %v1154_v19 = vld [vmem:[%s1482_s15 + $0x8] sm:$0xff]  }
 0x6bb   :  { %v1155_v20 = vld [vmem:[%s1482_s15 + $0x10] sm:$0xff]  }
 0x6bc   :  { %v500_v22 = vsel %vm141_vm2, %v495_v21, 0.0 }
 0x6bd   :  { %501 = vadd.xlane.f32.xlu0 %v500_v22 }
 0x74a   :  { %v502_v23 = vpop.xlane.xlu0 %501 }
 0x74b   :  { %v503_v24 = vmul.f32 0.03125, %v502_v23 }
 0x74d   :  { %v504_v25 = vsub.f32 %v495_v21, %v503_v24  ;;  %v979_v21 = vld [vmem:[%s1483_s14] ss:$0 sm:$0xff] }
 0x74f   :  { %v505_v26 = vmul.f32 %v504_v25, %v504_v25 }
 0x751   :  { %v506_v27 = vsel %vm141_vm2, %v505_v26, 0.0 }
 0x752   :  { %507 = vadd.xlane.f32.xlu1 %v506_v27 }
 0x7df   :  { %v508_v30 = vpop.xlane.xlu1 %507 }
 0x7e0   :  { %v509_v31 = vmul.f32 0.03125, %v508_v30 }
 0x7e2   :  { %v510_v32 = vadd.f32 1e-05, %v509_v31 }
 0x7e4   :  { %1160 = vrsqrt.f32 %v510_v32 }
 0x7ee   :  { %v1161_v33 = vpop.eup %1160 }
 0x7ef   :  { %v512_v35 = vmul.f32 %v1161_v33, %v504_v25 }
 0x7f1   :  { %v519_v37 = vmul.f32 %v938_v34, %v512_v35 }
 0x7f3   :  { %v526_v38 = vadd.f32 %v939_v36, %v519_v37  ;;  %v887_v37 = vlaneseq }
 0x7f5   :  { %v527_v40 = vpack.c.bf16 %v526_v38, %v526_v38 }
 0x7f7   :  { %1083 = vmatmul.mubr.msk.bf16.vlgmr.msra.gmra.mrb[12].mxu0 %vm141_vm2, %v527_v40 }
 0x7f8   :  { %1087 = vmatpush3.bf16.msra.mxu0 %v1143_v39  ;;  %1102 = vmatprep.mubr.msk.bf16.mxu0 %vm1169_vm0, %v1168_v0 }
 0x7f9   :  { %1088 = vmatprep.subr.bf16.mxu0 %v1168_v0 }
 0x7fc   :  { %1089 = vmatpush3.bf16.msra.mxu0 %v1144_v41 }
 0x7fd   :  { %1090 = vmatprep.subr.bf16.mxu0 %v1168_v0 }
 0x800   :  { %1091 = vmatpush3.bf16.msra.mxu0 %v1145_v42 }
 0x801   :  { %1092 = vmatprep.subr.bf16.mxu0 %v1168_v0 }
 0x804   :  { %1093 = vmatpush3.bf16.msra.mxu0 %v1146_v43 }
 0x805   :  { %1094 = vmatprep.subr.bf16.mxu0 %v1168_v0 }
 0x808   :  { %1095 = vmatpush3.bf16.msra.mxu0 %v1147_v44 }
 0x809   :  { %1096 = vmatprep.subr.bf16.mxu0 %v1168_v0 }
 0x80c   :  { %1097 = vmatpush3.bf16.msra.mxu0 %v1148_v45 }
 0x80d   :  { %1098 = vmatprep.subr.bf16.mxu0 %v1168_v0 }
 0x810   :  { %1099 = vmatpush3.bf16.msra.mxu0 %v1149_v46 }
 0x811   :  { %1100 = vmatprep.subr.bf16.mxu0 %v1168_v0 }
 0x814   :  { %1101 = vmatpush3.bf16.msra.mxu0 %v1150_v47 }
 0x8ca   :  { %v590_v49 = vpop.f32.mrb[12].mxu0 }
 0x8cb   :  { %v591_v50 = vadd.f32 %v945_v48, %v590_v49  ;;  %v1084_v51 = vpop.f32.mrb[13].mxu0 }
 0x8cc   :  { %v593_v52 = vpop.f32.mrb[14].mxu0 }
 0x8cd   :  { %v596_v53 = vmax.f32 %v591_v50, 0.0  ;;  %v1085_v54 = vpop.f32.mrb[15].mxu0 }
 0x8cf   :  { %v597_v55 = vpack.c.bf16 %v596_v53, %v596_v53 }
 0x8d1   :  { %1103 = vmatmul.mubr.bf16.vlgmr.msra.gmra.mrb[16].mxu0 %v597_v55 }
 0x9a4   :  { %v705_v57 = vpop.f32.mrb[16].mxu0 }
 0x9a5   :  { %v706_v58 = vadd.f32 %v966_v56, %v705_v57  ;;  %v1104_v59 = vpop.f32.mrb[17].mxu0 }
 0x9a6   :  { %v708_v60 = vpop.f32.mrb[18].mxu0 }
 0x9a7   :  { %v1105_v61 = vpop.f32.mrb[19].mxu0  ;;  %v711_v62 = vadd.f32 %v706_v58, %v526_v38  ;;  %v888_v38 = vand.u32 127, %v887_v37 }
 0x9a9   :  { %v716_v63 = vsel %vm141_vm2, %v711_v62, 0.0  ;;  %vm889_vm4 = vcmp.lt.s32.totalorder %v888_v38, 8 }
 0x9aa   :  { %717 = vadd.xlane.f32.xlu0 %v716_v63 }
 0xa37   :  { %v718_v1 = vpop.xlane.xlu0 %717 }
 0xa38   :  { %v719_v2 = vmul.f32 0.03125, %v718_v1 }
 0xa3a   :  { %v720_v3 = vsub.f32 %v711_v62, %v719_v2 }
 0xa3c   :  { %v721_v4 = vmul.f32 %v720_v3, %v720_v3 }
 0xa3e   :  { %v722_v5 = vsel %vm141_vm2, %v721_v4, 0.0 }
 0xa3f   :  { %723 = vadd.xlane.f32.xlu1 %v722_v5 }
 0xacc   :  { %v724_v8 = vpop.xlane.xlu1 %723 }
 0xacd   :  { %v725_v9 = vmul.f32 0.03125, %v724_v8 }
 0xacf   :  { %v726_v10 = vadd.f32 1e-05, %v725_v9 }
 0xad1   :  { %1162 = vrsqrt.f32 %v726_v10 }
 0xadb   :  { %v1163_v11 = vpop.eup %1162 }
 0xadc   :  { %v728_v13 = vmul.f32 %v1163_v11, %v720_v3 }
 0xade   :  { %v735_v15 = vmul.f32 %v977_v12, %v728_v13 }
 0xae0   :  { %v742_v16 = vadd.f32 %v978_v14, %v735_v15 }
 0xae2   :  { %v743_v18 = vpack.c.bf16 %v742_v16, %v742_v16 }
 0xae4   :  { %1111 = vmatmul.mubr.msk.bf16.vlgmr.msra.gmra.mrb[8].mxu1 %vm141_vm2, %v743_v18 }
 0xae5   :  { %1115 = vmatpush3.bf16.msra.mxu1 %v1153_v17  ;;  %1120 = vmatprep.mubr.msk.bf16.mxu1 %vm1169_vm0, %v1168_v0 }
 0xae6   :  { %1116 = vmatprep.subr.bf16.mxu1 %v1168_v0 }
 0xae9   :  { %1117 = vmatpush3.bf16.msra.mxu1 %v1154_v19 }
 0xaea   :  { %1118 = vmatprep.subr.bf16.mxu1 %v1168_v0  ;;  %v983_v0 = vld [vmem:[%s1484_s16] ss:$0 sm:$0xff] }
 0xaed   :  { %1119 = vmatpush3.bf16.msra.mxu1 %v1155_v20 }
 0xbb7   :  { %v804_v22 = vpop.f32.mrb[8].mxu1 }
 0xbb8   :  { %v805_v23 = vadd.f32 %v979_v21, %v804_v22  ;;  %v1112_v24 = vpop.f32.mrb[9].mxu1 }
 0xbb9   :  { %v807_v25 = vpop.f32.mrb[10].mxu1 }
 0xbba   :  { %v810_v26 = vmax.f32 %v805_v23, 0.0  ;;  %v1113_v27 = vpop.f32.mrb[11].mxu1 }
 0xbbc   :  { %v811_v28 = vpack.c.bf16 %v810_v26, %v810_v26 }
 0xbbe   :  { %1121 = vmatmul.mubr.msk.bf16.vlgmr.msra.gmra.mrb[12].mxu1 %vm843_vm3, %v811_v28 }
 0xc91   :  { %v881_v29 = vpop.f32.mrb[12].mxu1 }
 0xc92   :  { %v882_v30 = vadd.f32 %v983_v0, %v881_v29  ;;  %v1122_v31 = vpop.f32.mrb[13].mxu1 }
 0xc93   :  { %v884_v32 = vpop.f32.mrb[14].mxu1 }
 0xc94   :  { %v988_v33 = vmul.f32 -1.442695, %v882_v30  ;;  %v1123_v34 = vpop.f32.mrb[15].mxu1  ;;  %v896_v39 = vmax.f32 %v882_v30, 0.0 }
 0xc96   :  { %1164 = vpow2.f32 %v988_v33 }
 0xca0   :  { %v1165_v35 = vpop.eup %1164 }
 0xca1   :  { %v893_v36 = vadd.f32 1.0, %v1165_v35 }
 0xca3   :  { %1166 = vrcp.f32 %v893_v36 }
 0xcad   :  { %v1167_v40 = vpop.eup %1166 }
 0xcae   :  { %v897_v41 = vsel %vm889_vm4, %v1167_v40, %v896_v39 }
 0xcaf   :  { %898 = vst [vmem:[%s1485_s17] sm:$0xff] %v897_v41 }

// kernel: _forward_impl.1
= control target key start
LH: loop header
LB: loop body
LE: loop exit
PB: predicated region body
PF: predicated region fallthrough
CT: control target
= control target key end

     0   :  { %v1168_v0 = vmov 0.0   ;;  %vm1169_vm0 = vmmov 0   ;;  %vm73_vm1 = vcmask 130048   ;;  %vm141_vm2 = vcmask 261120   ;;  %s1468_s1 = inlined_call_operand.vmem [shape: bf16[16,32], index: 1, kind: input, shape index: {}]   ;;  %s1469_s0 = inlined_call_operand.vmem [shape: bf16[8,16], index: 0, kind: input, shape index: {}]   ;;  %s1470_s3 = inlined_call_operand.vmem [shape: bf16[2,32,32], index: 3, kind: input, shape index: {}]   ;;  %s1471_s2 = inlined_call_operand.vmem [shape: f32[1,32], index: 2, kind: input, shape index: {}]   ;;  %s1472_s4 = inlined_call_operand.vmem [shape: f32[2,1,32], index: 4, kind: input, shape index: {}]   ;;  %s1473_s7 = inlined_call_operand.vmem [shape: bf16[2,32,128], index: 7, kind: input, shape index: {}]   ;;  %s1474_s9 = inlined_call_operand.vmem [shape: bf16[2,128,32], index: 9, kind: input, shape index: {}]   ;;  %s1475_s5 = inlined_call_operand.vmem [shape: f32[2,1,32], index: 5, kind: input, shape index: {}]   ;;  %s1476_s6 = inlined_call_operand.vmem [shape: f32[2,1,32], index: 6, kind: input, shape index: {}]   ;;  %s1477_s8 = inlined_call_operand.vmem [shape: f32[2,1,128], index: 8, kind: input, shape index: {}]   ;;  %s1478_s10 = inlined_call_operand.vmem [shape: f32[2,1,32], index: 10, kind: input, shape index: {}]   ;;  %s1479_s11 = inlined_call_operand.vmem [shape: f32[2,1,32], index: 11, kind: input, shape index: {}]   ;;  %s1480_s12 = inlined_call_operand.vmem [shape: f32[2,1,32], index: 12, kind: input, shape index: {}]   ;;  %s1481_s13 = inlined_call_operand.vmem [shape: bf16[32,48], index: 13, kind: input, shape index: {}]   ;;  %s1482_s15 = inlined_call_operand.vmem [shape: bf16[48,128], index: 15, kind: input, shape index: {}]   ;;  %s1483_s14 = inlined_call_operand.vmem [shape: f32[1,48], index: 14, kind: input, shape index: {}]   ;;  %s1484_s16 = inlined_call_operand.vmem [shape: f32[1,128], index: 16, kind: input, shape index: {}]   ;;  %s1485_s17 = inlined_call_operand.vmem [shape: f32[8,128], index: 17, kind: output, shape index: {}]  }
   0x1   :  { %1486 = sst [smem:[#allocation2_spill]] %s1468_s1  ;;  %1028 = vmatprep.subr.bf16.mxu0 %v1168_v0  ;;  %1030 = vmatprep.mubr.msk.bf16.mxu0 %vm1169_vm0, %v1168_v0  ;;  %v1127_v3 = vld [vmem:[%s1470_s3] sm:$0xff]   ;;  %v1128_v4 = vld [vmem:[%s1470_s3 + $0x8] sm:$0xff]   ;;  %v1133_v29 = vld [vmem:[%s1474_s9 + $0x10] sm:$0xff]   ;;  %vm843_vm3 = vcmask 392192  }
   0x2   :  { %1487 = sst [smem:[#allocation3_spill]] %s1469_s0  ;;  %s1488_s26 = sld [smem:[#allocation2_spill]]  ;;  %1034 = vmatprep.subr.bf16.mxu1 %v1168_v0  ;;  %1038 = vmatprep.mubr.msk.bf16.mxu1 %vm1169_vm0, %v1168_v0  ;;  %v903_v5 = vld [vmem:[%s1471_s2] ss:$0 sm:$0xff]  ;;  %v1130_v26 = vld [vmem:[%s1473_s7 + $0x8] sm:$0xff]   ;;  %v1134_v30 = vld [vmem:[%s1474_s9 + $0x18] sm:$0xff]  }
   0x3   :  { %s1489_s29 = sld [smem:[#allocation3_spill]]  ;;  %1035 = vmatpush3.bf16.msra.mxu1 %v1127_v3  ;;  %v906_v12 = vld [vmem:[%s1472_s4] ss:$0 sm:$0xff]  ;;  %v1132_v28 = vld [vmem:[%s1474_s9 + $0x8] sm:$0xff]   ;;  %v1137_v43 = vld [vmem:[%s1474_s9 + $0x30] sm:$0xff]  }
   0x4   :  { %1036 = vmatprep.subr.bf16.mxu1 %v1168_v0  ;;  %v1129_v25 = vld [vmem:[%s1473_s7] sm:$0xff]   ;;  %v1136_v32 = vld [vmem:[%s1474_s9 + $0x28] sm:$0xff]   ;;  %v1138_v44 = vld [vmem:[%s1474_s9 + $0x38] sm:$0xff]  }
   0x5   :  { %v1131_v27 = vld [vmem:[%s1474_s9] sm:$0xff]   ;;  %v1139_v3 = vld [vmem:[%s1470_s3 + $0x10] sm:$0xff]  }
   0x6   :  { %v1135_v31 = vld [vmem:[%s1474_s9 + $0x20] sm:$0xff]  }
   0x7   :  { %1037 = vmatpush3.bf16.msra.mxu1 %v1128_v4  ;;  %v910_v37 = vld [vmem:[%s1475_s5] ss:$0 sm:$0xff]  ;;  %v1140_v4 = vld [vmem:[%s1470_s3 + $0x18] sm:$0xff]  }
   0x8   :  { %v1126_v1 = vld [vmem:[%s1488_s26] sm:$0xff]   ;;  %1050 = vmatprep.subr.bf16.mxu1 %v1168_v0 }
   0x9   :  { %1029 = vmatpush3.bf16.msra.mxu0 %v1126_v1  ;;  %v57_v2 = vld [vmem:[%s1489_s29] sm:$0xf] }
   0xa   :  { %1042 = vmatprep.subr.bf16.mxu0 %v1168_v0  ;;  %v911_v39 = vld [vmem:[%s1476_s6] ss:$0 sm:$0xff] }
   0xb   :  { %v912_v45 = vld [vmem:[%s1477_s8] ss:$0 sm:$0xff] }
   0xc   :  { %1031 = vmatmul.mubr.msk.bf16.vlgmr.msra.gmra.mrb[0].mxu0 %vm73_vm1, %v57_v2  ;;  %v916_v53 = vld [vmem:[%s1478_s10] ss:$0 sm:$0xff] }
   0xd   :  { %1046 = vmatprep.mubr.msk.bf16.mxu0 %vm1169_vm0, %v1168_v0  ;;  %1043 = vmatpush3.bf16.msra.mxu0 %v1129_v25 }
   0xe   :  { %1044 = vmatprep.subr.bf16.mxu0 %v1168_v0 }
  0x11   :  { %1045 = vmatpush3.bf16.msra.mxu0 %v1130_v26 }
  0x12   :  { %1070 = vmatprep.subr.bf16.mxu0 %v1168_v0 }
  0xdf   :  { %v111_v6 = vpop.f32.mrb[0].mxu0 }
  0xe0   :  { %v112_v7 = vadd.f32 %v903_v5, %v111_v6  ;;  %v1032_v8 = vpop.f32.mrb[1].mxu0 }
  0xe1   :  { %v114_v9 = vpop.f32.mrb[2].mxu0 }
  0xe2   :  { %v117_v10 = vpack.c.bf16 %v112_v7, %v112_v7  ;;  %v1033_v11 = vpop.f32.mrb[3].mxu0  ;;  %v925_v9 = vld [vmem:[%s1479_s11] ss:$0 sm:$0xff] }
  0xe3   :  { %v926_v11 = vld [vmem:[%s1480_s12] ss:$0 sm:$0xff] }
  0xe4   :  { %1039 = vmatmul.mubr.msk.bf16.vlgmr.msra.gmra.mrb[0].mxu1 %vm141_vm2, %v117_v10 }
  0xe5   :  { %1066 = vmatprep.mubr.msk.bf16.mxu1 %vm1169_vm0, %v1168_v0  ;;  %1051 = vmatpush3.bf16.msra.mxu1 %v1131_v27 }
  0xe6   :  { %1052 = vmatprep.subr.bf16.mxu1 %v1168_v0 }
  0xe9   :  { %1053 = vmatpush3.bf16.msra.mxu1 %v1132_v28  ;;  %v1141_v28 = vld [vmem:[%s1473_s7 + $0x10] sm:$0xff]  }
  0xea   :  { %1054 = vmatprep.subr.bf16.mxu1 %v1168_v0 }
  0xed   :  { %1055 = vmatpush3.bf16.msra.mxu1 %v1133_v29  ;;  %v1142_v29 = vld [vmem:[%s1473_s7 + $0x18] sm:$0xff]  }
  0xee   :  { %1056 = vmatprep.subr.bf16.mxu1 %v1168_v0 }
  0xf1   :  { %1057 = vmatpush3.bf16.msra.mxu1 %v1134_v30 }
  0xf2   :  { %1058 = vmatprep.subr.bf16.mxu1 %v1168_v0 }
  0xf5   :  { %1059 = vmatpush3.bf16.msra.mxu1 %v1135_v31 }
  0xf6   :  { %1060 = vmatprep.subr.bf16.mxu1 %v1168_v0 }
  0xf9   :  { %1061 = vmatpush3.bf16.msra.mxu1 %v1136_v32 }
  0xfa   :  { %1062 = vmatprep.subr.bf16.mxu1 %v1168_v0 }
  0xfd   :  { %1063 = vmatpush3.bf16.msra.mxu1 %v1137_v43  ;;  %v1146_v43 = vld [vmem:[%s1474_s9 + $0x58] sm:$0xff]  }
  0xfe   :  { %1064 = vmatprep.subr.bf16.mxu1 %v1168_v0 }
 0x101   :  { %1065 = vmatpush3.bf16.msra.mxu1 %v1138_v44  ;;  %v1147_v44 = vld [vmem:[%s1474_s9 + $0x60] sm:$0xff]  }
 0x102   :  { %1106 = vmatprep.subr.bf16.mxu1 %v1168_v0 }
 0x1b7   :  { %v179_v13 = vpop.f32.mrb[0].mxu1 }
 0x1b8   :  { %v180_v14 = vadd.f32 %v906_v12, %v179_v13  ;;  %v1040_v15 = vpop.f32.mrb[1].mxu1 }
 0x1b9   :  { %v182_v16 = vpop.f32.mrb[2].mxu1  ;;  %v932_v15 = vld [vmem:[%s1472_s4 + $0x1] ss:$0 sm:$0xff] }
 0x1ba   :  { %v1041_v17 = vpop.f32.mrb[3].mxu1  ;;  %v185_v18 = vadd.f32 %v180_v14, %v112_v7 }
 0x1bc   :  { %v188_v19 = vsel %vm141_vm2, %v185_v18, 0.0 }
 0x1bd   :  { %189 = vadd.xlane.f32.xlu0 %v188_v19 }
 0x24a   :  { %v190_v20 = vpop.xlane.xlu0 %189 }
 0x24b   :  { %v192_v21 = vmul.f32 0.03125, %v190_v20 }
 0x24d   :  { %v193_v22 = vsub.f32 %v185_v18, %v192_v21 }
 0x24f   :  { %v194_v23 = vmul.f32 %v193_v22, %v193_v22 }
 0x251   :  { %v195_v24 = vsel %vm141_vm2, %v194_v23, 0.0 }
 0x252   :  { %196 = vadd.xlane.f32.xlu0 %v195_v24 }
 0x2df   :  { %v197_v33 = vpop.xlane.xlu0 %196 }
 0x2e0   :  { %v198_v34 = vmul.f32 0.03125, %v197_v33 }
 0x2e2   :  { %v199_v35 = vadd.f32 1e-05, %v198_v34  ;;  %v938_v34 = vld [vmem:[%s1475_s5 + $0x1] ss:$0 sm:$0xff] }
 0x2e4   :  { %1156 = vrsqrt.f32 %v199_v35 }
 0x2ee   :  { %v1157_v36 = vpop.eup %1156 }
 0x2ef   :  { %v201_v38 = vmul.f32 %v1157_v36, %v193_v22  ;;  %v939_v36 = vld [vmem:[%s1476_s6 + $0x1] ss:$0 sm:$0xff] }
 0x2f1   :  { %v208_v40 = vmul.f32 %v910_v37, %v201_v38 }
 0x2f3   :  { %v215_v41 = vadd.f32 %v911_v39, %v208_v40  ;;  %v1143_v39 = vld [vmem:[%s1474_s9 + $0x40] sm:$0xff]  }
 0x2f5   :  { %v216_v42 = vpack.c.bf16 %v215_v41, %v215_v41 }
 0x2f7   :  { %1047 = vmatmul.mubr.msk.bf16.vlgmr.msra.gmra.mrb[4].mxu0 %vm141_vm2, %v216_v42  ;;  %v1145_v42 = vld [vmem:[%s1474_s9 + $0x50] sm:$0xff]  }
 0x2f8   :  { %1074 = vmatprep.mubr.msk.bf16.mxu0 %vm1169_vm0, %v1168_v0  ;;  %1071 = vmatpush3.bf16.msra.mxu0 %v1139_v3 }
 0x2f9   :  { %1072 = vmatprep.subr.bf16.mxu0 %v1168_v0 }
 0x2fc   :  { %1073 = vmatpush3.bf16.msra.mxu0 %v1140_v4 }
 0x2fd   :  { %1078 = vmatprep.subr.bf16.mxu0 %v1168_v0 }
 0x3ca   :  { %v277_v46 = vpop.f32.mrb[4].mxu0 }
 0x3cb   :  { %v278_v47 = vadd.f32 %v912_v45, %v277_v46  ;;  %v1048_v48 = vpop.f32.mrb[5].mxu0  ;;  %v1148_v45 = vld [vmem:[%s1474_s9 + $0x68] sm:$0xff]   ;;  %v1149_v46 = vld [vmem:[%s1474_s9 + $0x70] sm:$0xff]  }
 0x3cc   :  { %v280_v49 = vpop.f32.mrb[6].mxu0  ;;  %v945_v48 = vld [vmem:[%s1477_s8 + $0x1] ss:$0 sm:$0xff] }
 0x3cd   :  { %v283_v50 = vmax.f32 %v278_v47, 0.0  ;;  %v1049_v51 = vpop.f32.mrb[7].mxu0  ;;  %v1150_v47 = vld [vmem:[%s1474_s9 + $0x78] sm:$0xff]  }
 0x3cf   :  { %v284_v52 = vpack.c.bf16 %v283_v50, %v283_v50 }
 0x3d1   :  { %1067 = vmatmul.mubr.bf16.vlgmr.msra.gmra.mrb[4].mxu1 %v284_v52 }
 0x3d2   :  { %1110 = vmatprep.mubr.msk.bf16.mxu1 %vm1169_vm0, %v1168_v0 }
 0x4a4   :  { %v390_v54 = vpop.f32.mrb[4].mxu1 }
 0x4a5   :  { %v391_v55 = vadd.f32 %v916_v53, %v390_v54  ;;  %v1068_v56 = vpop.f32.mrb[5].mxu1 }
 0x4a6   :  { %v393_v57 = vpop.f32.mrb[6].mxu1  ;;  %v966_v56 = vld [vmem:[%s1478_s10 + $0x1] ss:$0 sm:$0xff] }
 0x4a7   :  { %v1069_v58 = vpop.f32.mrb[7].mxu1  ;;  %v396_v59 = vadd.f32 %v391_v55, %v215_v41  ;;  %v1144_v41 = vld [vmem:[%s1474_s9 + $0x48] sm:$0xff]  }
 0x4a9   :  { %v399_v60 = vsel %vm141_vm2, %v396_v59, 0.0 }
 0x4aa   :  { %400 = vadd.xlane.f32.xlu1 %v399_v60 }
 0x537   :  { %v401_v61 = vpop.xlane.xlu1 %400 }
 0x538   :  { %v402_v62 = vmul.f32 0.03125, %v401_v61 }
 0x53a   :  { %v403_v63 = vsub.f32 %v396_v59, %v402_v62 }
 0x53c   :  { %v404_v1 = vmul.f32 %v403_v63, %v403_v63 }
 0x53e   :  { %v405_v2 = vsel %vm141_vm2, %v404_v1, 0.0 }
 0x53f   :  { %406 = vadd.xlane.f32.xlu1 %v405_v2 }
 0x5cc   :  { %v407_v5 = vpop.xlane.xlu1 %406 }
 0x5cd   :  { %v408_v6 = vmul.f32 0.03125, %v407_v5 }
 0x5cf   :  { %v409_v7 = vadd.f32 1e-05, %v408_v6  ;;  %v1151_v6 = vld [vmem:[%s1481_s13] sm:$0xff]  }
 0x5d0   :  { %1107 = vmatpush3.bf16.msra.mxu1 %v1151_v6 }
 0x5d1   :  { %1158 = vrsqrt.f32 %v409_v7  ;;  %1108 = vmatprep.subr.bf16.mxu1 %v1168_v0  ;;  %v1152_v7 = vld [vmem:[%s1481_s13 + $0x8] sm:$0xff]  }
 0x5d4   :  { %1109 = vmatpush3.bf16.msra.mxu1 %v1152_v7 }
 0x5d5   :  { %1114 = vmatprep.subr.bf16.mxu1 %v1168_v0 }
 0x5db   :  { %v1159_v8 = vpop.eup %1158 }
 0x5dc   :  { %v411_v10 = vmul.f32 %v1159_v8, %v403_v63 }
 0x5de   :  { %v418_v12 = vmul.f32 %v925_v9, %v411_v10 }
 0x5e0   :  { %v425_v13 = vadd.f32 %v926_v11, %v418_v12  ;;  %v977_v12 = vld [vmem:[%s1479_s11 + $0x1] ss:$0 sm:$0xff] }
 0x5e2   :  { %v426_v14 = vpack.c.bf16 %v425_v13, %v425_v13 }
 0x5e4   :  { %1075 = vmatmul.mubr.msk.bf16.vlgmr.msra.gmra.mrb[8].mxu0 %vm141_vm2, %v426_v14  ;;  %v978_v14 = vld [vmem:[%s1480_s12 + $0x1] ss:$0 sm:$0xff] }
 0x5e5   :  { %1082 = vmatprep.mubr.msk.bf16.mxu0 %vm1169_vm0, %v1168_v0  ;;  %1079 = vmatpush3.bf16.msra.mxu0 %v1141_v28 }
 0x5e6   :  { %1080 = vmatprep.subr.bf16.mxu0 %v1168_v0 }
 0x5e9   :  { %1081 = vmatpush3.bf16.msra.mxu0 %v1142_v29 }
 0x5ea   :  { %1086 = vmatprep.subr.bf16.mxu0 %v1168_v0 }
 0x6b7   :  { %v489_v16 = vpop.f32.mrb[8].mxu0 }
 0x6b8   :  { %v490_v17 = vadd.f32 %v932_v15, %v489_v16  ;;  %v1076_v18 = vpop.f32.mrb[9].mxu0 }
 0x6b9   :  { %v492_v19 = vpop.f32.mrb[10].mxu0 }
 0x6ba   :  { %v1077_v20 = vpop.f32.mrb[11].mxu0  ;;  %v495_v21 = vadd.f32 %v490_v17, %v425_v13  ;;  %v1153_v17 = vld [vmem:[%s1482_s15] sm:$0xff]   ;;  %v1154_v19 = vld [vmem:[%s1482_s15 + $0x8] sm:$0xff]  }
 0x6bb   :  { %v1155_v20 = vld [vmem:[%s1482_s15 + $0x10] sm:$0xff]  }
 0x6bc   :  { %v500_v22 = vsel %vm141_vm2, %v495_v21, 0.0 }
 0x6bd   :  { %501 = vadd.xlane.f32.xlu0 %v500_v22 }
 0x74a   :  { %v502_v23 = vpop.xlane.xlu0 %501 }
 0x74b   :  { %v503_v24 = vmul.f32 0.03125, %v502_v23 }
 0x74d   :  { %v504_v25 = vsub.f32 %v495_v21, %v503_v24  ;;  %v979_v21 = vld [vmem:[%s1483_s14] ss:$0 sm:$0xff] }
 0x74f   :  { %v505_v26 = vmul.f32 %v504_v25, %v504_v25 }
 0x751   :  { %v506_v27 = vsel %vm141_vm2, %v505_v26, 0.0 }
 0x752   :  { %507 = vadd.xlane.f32.xlu1 %v506_v27 }
 0x7df   :  { %v508_v30 = vpop.xlane.xlu1 %507 }
 0x7e0   :  { %v509_v31 = vmul.f32 0.03125, %v508_v30 }
 0x7e2   :  { %v510_v32 = vadd.f32 1e-05, %v509_v31 }
 0x7e4   :  { %1160 = vrsqrt.f32 %v510_v32 }
 0x7ee   :  { %v1161_v33 = vpop.eup %1160 }
 0x7ef   :  { %v512_v35 = vmul.f32 %v1161_v33, %v504_v25 }
 0x7f1   :  { %v519_v37 = vmul.f32 %v938_v34, %v512_v35 }
 0x7f3   :  { %v526_v38 = vadd.f32 %v939_v36, %v519_v37  ;;  %v887_v37 = vlaneseq }
 0x7f5   :  { %v527_v40 = vpack.c.bf16 %v526_v38, %v526_v38 }
 0x7f7   :  { %1083 = vmatmul.mubr.msk.bf16.vlgmr.msra.gmra.mrb[12].mxu0 %vm141_vm2, %v527_v40 }
 0x7f8   :  { %1087 = vmatpush3.bf16.msra.mxu0 %v1143_v39  ;;  %1102 = vmatprep.mubr.msk.bf16.mxu0 %vm1169_vm0, %v1168_v0 }
 0x7f9   :  { %1088 = vmatprep.subr.bf16.mxu0 %v1168_v0 }
 0x7fc   :  { %1089 = vmatpush3.bf16.msra.mxu0 %v1144_v41 }
 0x7fd   :  { %1090 = vmatprep.subr.bf16.mxu0 %v1168_v0 }
 0x800   :  { %1091 = vmatpush3.bf16.msra.mxu0 %v1145_v42 }
 0x801   :  { %1092 = vmatprep.subr.bf16.mxu0 %v1168_v0 }
 0x804   :  { %1093 = vmatpush3.bf16.msra.mxu0 %v1146_v43 }
 0x805   :  { %1094 = vmatprep.subr.bf16.mxu0 %v1168_v0 }
 0x808   :  { %1095 = vmatpush3.bf16.msra.mxu0 %v1147_v44 }
 0x809   :  { %1096 = vmatprep.subr.bf16.mxu0 %v1168_v0 }
 0x80c   :  { %1097 = vmatpush3.bf16.msra.mxu0 %v1148_v45 }
 0x80d   :  { %1098 = vmatprep.subr.bf16.mxu0 %v1168_v0 }
 0x810   :  { %1099 = vmatpush3.bf16.msra.mxu0 %v1149_v46 }
 0x811   :  { %1100 = vmatprep.subr.bf16.mxu0 %v1168_v0 }
 0x814   :  { %1101 = vmatpush3.bf16.msra.mxu0 %v1150_v47 }
 0x8ca   :  { %v590_v49 = vpop.f32.mrb[12].mxu0 }
 0x8cb   :  { %v591_v50 = vadd.f32 %v945_v48, %v590_v49  ;;  %v1084_v51 = vpop.f32.mrb[13].mxu0 }
 0x8cc   :  { %v593_v52 = vpop.f32.mrb[14].mxu0 }
 0x8cd   :  { %v596_v53 = vmax.f32 %v591_v50, 0.0  ;;  %v1085_v54 = vpop.f32.mrb[15].mxu0 }
 0x8cf   :  { %v597_v55 = vpack.c.bf16 %v596_v53, %v596_v53 }
 0x8d1   :  { %1103 = vmatmul.mubr.bf16.vlgmr.msra.gmra.mrb[16].mxu0 %v597_v55 }
 0x9a4   :  { %v705_v57 = vpop.f32.mrb[16].mxu0 }
 0x9a5   :  { %v706_v58 = vadd.f32 %v966_v56, %v705_v57  ;;  %v1104_v59 = vpop.f32.mrb[17].mxu0 }
 0x9a6   :  { %v708_v60 = vpop.f32.mrb[18].mxu0 }
 0x9a7   :  { %v1105_v61 = vpop.f32.mrb[19].mxu0  ;;  %v711_v62 = vadd.f32 %v706_v58, %v526_v38  ;;  %v888_v38 = vand.u32 127, %v887_v37 }
 0x9a9   :  { %v716_v63 = vsel %vm141_vm2, %v711_v62, 0.0  ;;  %vm889_vm4 = vcmp.lt.s32.totalorder %v888_v38, 8 }
 0x9aa   :  { %717 = vadd.xlane.f32.xlu0 %v716_v63 }
 0xa37   :  { %v718_v1 = vpop.xlane.xlu0 %717 }
 0xa38   :  { %v719_v2 = vmul.f32 0.03125, %v718_v1 }
 0xa3a   :  { %v720_v3 = vsub.f32 %v711_v62, %v719_v2 }
 0xa3c   :  { %v721_v4 = vmul.f32 %v720_v3, %v720_v3 }
 0xa3e   :  { %v722_v5 = vsel %vm141_vm2, %v721_v4, 0.0 }
 0xa3f   :  { %723 = vadd.xlane.f32.xlu1 %v722_v5 }
 0xacc   :  { %v724_v8 = vpop.xlane.xlu1 %723 }
 0xacd   :  { %v725_v9 = vmul.f32 0.03125, %v724_v8 }
 0xacf   :  { %v726_v10 = vadd.f32 1e-05, %v725_v9 }
 0xad1   :  { %1162 = vrsqrt.f32 %v726_v10 }
 0xadb   :  { %v1163_v11 = vpop.eup %1162 }
 0xadc   :  { %v728_v13 = vmul.f32 %v1163_v11, %v720_v3 }
 0xade   :  { %v735_v15 = vmul.f32 %v977_v12, %v728_v13 }
 0xae0   :  { %v742_v16 = vadd.f32 %v978_v14, %v735_v15 }
 0xae2   :  { %v743_v18 = vpack.c.bf16 %v742_v16, %v742_v16 }
 0xae4   :  { %1111 = vmatmul.mubr.msk.bf16.vlgmr.msra.gmra.mrb[8].mxu1 %vm141_vm2, %v743_v18 }
 0xae5   :  { %1115 = vmatpush3.bf16.msra.mxu1 %v1153_v17  ;;  %1120 = vmatprep.mubr.msk.bf16.mxu1 %vm1169_vm0, %v1168_v0 }
 0xae6   :  { %1116 = vmatprep.subr.bf16.mxu1 %v1168_v0 }
 0xae9   :  { %1117 = vmatpush3.bf16.msra.mxu1 %v1154_v19 }
 0xaea   :  { %1118 = vmatprep.subr.bf16.mxu1 %v1168_v0  ;;  %v983_v0 = vld [vmem:[%s1484_s16] ss:$0 sm:$0xff] }
 0xaed   :  { %1119 = vmatpush3.bf16.msra.mxu1 %v1155_v20 }
 0xbb7   :  { %v804_v22 = vpop.f32.mrb[8].mxu1 }
 0xbb8   :  { %v805_v23 = vadd.f32 %v979_v21, %v804_v22  ;;  %v1112_v24 = vpop.f32.mrb[9].mxu1 }
 0xbb9   :  { %v807_v25 = vpop.f32.mrb[10].mxu1 }
 0xbba   :  { %v810_v26 = vmax.f32 %v805_v23, 0.0  ;;  %v1113_v27 = vpop.f32.mrb[11].mxu1 }
 0xbbc   :  { %v811_v28 = vpack.c.bf16 %v810_v26, %v810_v26 }
 0xbbe   :  { %1121 = vmatmul.mubr.msk.bf16.vlgmr.msra.gmra.mrb[12].mxu1 %vm843_vm3, %v811_v28 }
 0xc91   :  { %v881_v29 = vpop.f32.mrb[12].mxu1 }
 0xc92   :  { %v882_v30 = vadd.f32 %v983_v0, %v881_v29  ;;  %v1122_v31 = vpop.f32.mrb[13].mxu1 }
 0xc93   :  { %v884_v32 = vpop.f32.mrb[14].mxu1 }
 0xc94   :  { %v988_v33 = vmul.f32 -1.442695, %v882_v30  ;;  %v1123_v34 = vpop.f32.mrb[15].mxu1  ;;  %v896_v39 = vmax.f32 %v882_v30, 0.0 }
 0xc96   :  { %1164 = vpow2.f32 %v988_v33 }
 0xca0   :  { %v1165_v35 = vpop.eup %1164 }
 0xca1   :  { %v893_v36 = vadd.f32 1.0, %v1165_v35 }
 0xca3   :  { %1166 = vrcp.f32 %v893_v36 }
 0xcad   :  { %v1167_v40 = vpop.eup %1166 }
 0xcae   :  { %v897_v41 = vsel %vm889_vm4, %v1167_v40, %v896_v39 }
 0xcaf   :  { %898 = vst [vmem:[%s1485_s17] sm:$0xff] %v897_v41 }

</bundles_post_ra>
